<compile_context>
chip_gen: v5e
topology: v5e:2x2
jax: 0.10.0
libtpu: 0.0.40
codegen_flags: <defaults>
</compile_context>

<pallas_src>
import functools

import numpy as np
import jax
import jax.numpy as jnp
from jax.experimental import pallas as pl
from jax.experimental.pallas import tpu as pltpu

_BIG = 1.0e9  # sentinel coordinate -> guaranteed zero splat weight


# ---------------------------------------------------------------------------
# Kernel
# ---------------------------------------------------------------------------
def _softsplat_kernel(ptab_ref, cnt_ref, in_ref, fxy_ref, oxy_ref, out_ref,
                      acc_ref, *, out_channels, normalize, weights_bf16):
    """One (batch, q-tile, band-step) grid point.

    ptab_ref : (N*num_qt*band,) int32 SMEM - compacted p-tile ids (used by index_maps)
    cnt_ref  : (N*num_qt,)      int32 SMEM - live band length per (n, q-tile)
    in_ref   : (1, C_ext, TP)   input pixels (channels x pixels, lane-dense)
    fxy_ref  : (1, TP, 2)       displaced target coords (x, y) per input pixel
    oxy_ref  : (2, TQ)          output pixel coords (x; y), lane-dense
    out_ref  : (1, C_out, TQ)   output pixels
    acc_ref  : (C_ext, TQ)      f32 accumulator (resident across the band axis)
    """
    del ptab_ref  # consumed by the index_maps only
    n = pl.program_id(0)
    q = pl.program_id(1)
    j = pl.program_id(2)
    num_qt = pl.num_programs(1)
    nb = pl.num_programs(2)

    @pl.when(j == 0)
    def _init():
        acc_ref[...] = jnp.zeros_like(acc_ref)

    live = j < cnt_ref[n * num_qt + q]

    @pl.when(live)
    def _splat():
        inp = in_ref[0]                           # (C_ext, TP)
        tgt = fxy_ref[0]                          # (TP, 2)
        fx = tgt[:, 0:1]                          # (TP, 1)  p on sublanes
        fy = tgt[:, 1:2]                          # (TP, 1)
        ox = oxy_ref[0:1, :]                      # (1, TQ)  q on lanes
        oy = oxy_ref[1:2, :]                      # (1, TQ)

        # Separable hat weights; out-of-bounds / non-finite targets (sentinel
        # coords) evaluate to exactly 0, matching the CUDA bounds checks.
        wx = jnp.maximum(1.0 - jnp.abs(ox - fx), 0.0)   # (TP, TQ)
        wy = jnp.maximum(1.0 - jnp.abs(oy - fy), 0.0)   # (TP, TQ)
        m = wx * wy                                     # (TP, TQ)

        if weights_bf16:
            acc_ref[...] += jnp.dot(inp.astype(jnp.bfloat16),
                                    m.astype(jnp.bfloat16),
                                    preferred_element_type=jnp.float32)
        else:
            acc_ref[...] += jnp.dot(inp, m, preferred_element_type=jnp.float32)

    @pl.when(j == nb - 1)
    def _finalize():
        acc = acc_ref[...]
        if normalize:
            norm = acc[out_channels:out_channels + 1, :]
            norm = jnp.where(norm == 0.0, 1.0, norm)
            out_ref[0] = (acc[:out_channels, :] / norm).astype(out_ref.dtype)
        else:
            out_ref[0] = acc.astype(out_ref.dtype)


# ---------------------------------------------------------------------------
# Tile helpers
# ---------------------------------------------------------------------------
def _round_up(x, m):
    return ((x + m - 1) // m) * m


def _pick_tile(p_pad, cap):
    """Largest multiple of 128 that divides p_pad and is <= cap."""
    cap = max(128, min(cap, p_pad))
    best = 128
    t = 128
    while t <= cap:
        if p_pad % t == 0:
            best = t
        t += 128
    return best


# ---------------------------------------------------------------------------
# Wrapper
# ---------------------------------------------------------------------------
def _softsplat_sum(ten_in, ten_flow, num_out_channels, *, max_tq=1024,
                   max_tp=512, band_tiles=None, weights_bf16=False):
    """Splat ten_in (N, C_ext, H, W) along ten_flow (N, 2, H, W).

    Returns (N, num_out_channels, H, W).  If num_out_channels < C_ext, the last
    accumulated channel is the normalizer and the division is fused in-kernel.
    """
    N, C_ext, H, W = ten_in.shape
    P = H * W
    P_pad = _round_up(P, 128)
    normalize = num_out_channels < C_ext

    # v7x has 2 TensorCores: for N == 1 make sure there are >= 2 parallel q tiles.
    tq_cap = max_tq
    if N == 1 and P_pad >= 256:
        tq_cap = min(tq_cap, P_pad // 2)
    TQ = _pick_tile(P_pad, tq_cap)
    TP = _pick_tile(P_pad, max_tp)
    num_qt = P_pad // TQ
    num_pt = P_pad // TP

    ten_in = ten_in.astype(jnp.float32)
    ten_flow = ten_flow.astype(jnp.float32)

    # Input, channels on sublanes, pixels on lanes; padded pixels are zero.
    in_flat = jnp.pad(ten_in.reshape(N, C_ext, P), ((0, 0), (0, 0), (0, P_pad - P)))

    # Displaced target coordinates (precomputed once; non-finite -> sentinel).
    idx = jnp.arange(P, dtype=jnp.int32)
    ix = (idx % W).astype(jnp.float32)
    iy = (idx // W).astype(jnp.float32)
    flow_flat = ten_flow.reshape(N, 2, P)
    fx = ix[None, :] + flow_flat[:, 0, :]
    fy = iy[None, :] + flow_flat[:, 1, :]
    finite = jnp.isfinite(fx) & jnp.isfinite(fy)
    fxy = jnp.stack([jnp.where(finite, fx, -_BIG),
                     jnp.where(finite, fy, -_BIG)], axis=-1)       # (N, P, 2)
    fxy = jnp.pad(fxy, ((0, 0), (0, P_pad - P), (0, 0)), constant_values=-_BIG)

    # Output pixel coordinates; padded positions get sentinel (zero weight).
    pidx = jnp.arange(P_pad, dtype=jnp.int32)
    ox_full = jnp.where(pidx < P, (pidx % W).astype(jnp.float32), _BIG)
    oy_full = jnp.where(pidx < P, (pidx // W).astype(jnp.float32), _BIG)
    oxy = jnp.stack([ox_full, oy_full], axis=0)                    # (2, P_pad)

    # ---- band table: which p-tiles can splat into which q-tiles ------------
    fy_lo = jnp.pad(jnp.where(finite, fy, _BIG), ((0, 0), (0, P_pad - P)),
                    constant_values=_BIG).reshape(N, num_pt, TP).min(-1)
    fy_hi = jnp.pad(jnp.where(finite, fy, -_BIG), ((0, 0), (0, P_pad - P)),
                    constant_values=-_BIG).reshape(N, num_pt, TP).max(-1)
    ymin = jnp.floor(jnp.clip(fy_lo, -_BIG, _BIG)).astype(jnp.int32)      # (N, num_pt)
    ymax = (jnp.floor(jnp.clip(fy_hi, -_BIG, _BIG)) + 1.0).astype(jnp.int32)

    q_start = jnp.arange(num_qt, dtype=jnp.int32) * TQ
    q_end = q_start + (TQ - 1)
    row_lo = q_start // W
    row_hi = jnp.minimum(q_end // W, H - 1)
    overlap = ((ymax[:, None, :] >= row_lo[None, :, None]) &
               (ymin[:, None, :] <= row_hi[None, :, None]) &
               (row_lo[None, :, None] <= row_hi[None, :, None]))   # (N, num_qt, num_pt)
    counts = overlap.sum(-1).astype(jnp.int32)                     # (N, num_qt)

    if band_tiles is None:
        try:
            band_tiles = int(jax.device_get(jnp.max(counts)))      # concrete flow
        except Exception:
            band_tiles = num_pt                                    # traced: safe bound
    band_tiles = int(min(max(int(band_tiles), 1), num_pt))

    counts = jnp.minimum(counts, band_tiles)
    # Overlapping p-tiles first (ascending), then the rest.
    order = jnp.argsort(jnp.logical_not(overlap).astype(jnp.int32), axis=-1)
    ptab = order[..., :band_tiles].astype(jnp.int32)               # (N, num_qt, band)
    jj = jnp.arange(band_tiles, dtype=jnp.int32)
    valid = jj[None, None, :] < counts[..., None]
    last = jnp.minimum(jnp.maximum(counts - 1, 0), band_tiles - 1)
    fallback = jnp.take_along_axis(ptab, last[..., None], axis=-1)
    ptab = jnp.where(valid, ptab, fallback)          # padded steps repeat -> DMA elided
    ptab_flat = ptab.reshape(-1).astype(jnp.int32)
    counts_flat = counts.reshape(-1).astype(jnp.int32)

    # ---- pallas call --------------------------------------------------------
    def in_map(n, q, j, ptab, cnt):
        return (n, 0, ptab[(n * num_qt + q) * band_tiles + j])

    def fxy_map(n, q, j, ptab, cnt):
        return (n, ptab[(n * num_qt + q) * band_tiles + j], 0)

    def oxy_map(n, q, j, ptab, cnt):
        return (0, q)

    def out_map(n, q, j, ptab, cnt):
        return (n, 0, q)

    kernel = functools.partial(_softsplat_kernel, out_channels=num_out_channels,
                               normalize=normalize, weights_bf16=weights_bf16)

    flops = 2 * N * num_qt * band_tiles * C_ext * TP * TQ
    bytes_accessed = 4 * (N * num_qt * band_tiles * (C_ext + 2) * TP
                          + N * num_out_channels * P_pad + N * num_qt * 2 * TQ)
    cost = pl.CostEstimate(flops=int(flops), transcendentals=0,
                           bytes_accessed=int(bytes_accessed))

    out_flat = pl.pallas_call(
        kernel,
        out_shape=jax.ShapeDtypeStruct((N, num_out_channels, P_pad), jnp.float32),
        grid_spec=pltpu.PrefetchScalarGridSpec(
            num_scalar_prefetch=2,
            grid=(N, num_qt, band_tiles),
            in_specs=[
                pl.BlockSpec((1, C_ext, TP), in_map),
                pl.BlockSpec((1, TP, 2), fxy_map),
                pl.BlockSpec((2, TQ), oxy_map),
            ],
            out_specs=pl.BlockSpec((1, num_out_channels, TQ), out_map),
            scratch_shapes=[pltpu.VMEM((C_ext, TQ), jnp.float32)],
        ),
        compiler_params=pltpu.CompilerParams(
            dimension_semantics=("parallel", "parallel", "arbitrary"),
            vmem_limit_bytes=48 * 1024 * 1024),
        cost_estimate=cost,
    )(ptab_flat, counts_flat, in_flat, fxy, oxy)

    return out_flat[:, :, :P].reshape(N, num_out_channels, H, W)


def function_softsplat(ten_input, ten_flow, ten_metric, str_type,
                       weights_bf16=False):
    """JAX/Pallas port of FunctionSoftsplat (forward only)."""
    assert ten_metric is None or ten_metric.shape[1] == 1
    assert str_type in ["summation", "average", "linear", "softmax"]

    ten_input = ten_input.astype(jnp.float32)
    ten_flow = ten_flow.astype(jnp.float32)
    C = ten_input.shape[1]

    if str_type == "summation":
        ten_ext = ten_input
    elif str_type == "average":
        ones = jnp.ones_like(ten_input[:, :1])
        ten_ext = jnp.concatenate([ten_input, ones], axis=1)
    elif str_type == "linear":
        m = ten_metric.astype(jnp.float32)
        ten_ext = jnp.concatenate([ten_input * m, m], axis=1)
    else:  # softmax
        m = jnp.exp(ten_metric.astype(jnp.float32))
        ten_ext = jnp.concatenate([ten_input * m, m], axis=1)

    # Normalization (non-summation modes) is fused into the kernel.
    return _softsplat_sum(ten_ext, ten_flow, C, weights_bf16=weights_bf16)


class ModuleSoftsplat:
    """Mirror of the PyTorch ModuleSoftsplat (no learnable parameters)."""

    def __init__(self, str_type):
        assert str_type in ["summation", "average", "linear", "softmax"]
        self.str_type = str_type

    def __call__(self, ten_input, ten_flow, ten_metric=None):
        return function_softsplat(ten_input, ten_flow, ten_metric, self.str_type)


# ---------------------------------------------------------------------------
# Pure-numpy reference (direct port of the CUDA scatter) for verification.
# ---------------------------------------------------------------------------
def _ref_softsplat_sum(inp, flow):
    N, C, H, W = inp.shape
    out = np.zeros_like(inp)
    for n in range(N):
        for y in range(H):
            for x in range(W):
                fx = x + flow[n, 0, y, x]
                fy = y + flow[n, 1, y, x]
                if not (np.isfinite(fx) and np.isfinite(fy)):
                    continue
                nwx, nwy = int(np.floor(fx)), int(np.floor(fy))
                contribs = [
                    (nwx,     nwy,     (nwx + 1 - fx) * (nwy + 1 - fy)),
                    (nwx + 1, nwy,     (fx - nwx) * (nwy + 1 - fy)),
                    (nwx,     nwy + 1, (nwx + 1 - fx) * (fy - nwy)),
                    (nwx + 1, nwy + 1, (fx - nwx) * (fy - nwy)),
                ]
                for X, Y, w in contribs:
                    if 0 <= X < W and 0 <= Y < H:
                        out[n, :, Y, X] += inp[n, :, y, x] * w
    return out


def _ref_function_softsplat(inp, flow, metric, str_type):
    inp = inp.astype(np.float32)
    if str_type == "average":
        inp = np.concatenate(
            [inp, np.ones((inp.shape[0], 1, inp.shape[2], inp.shape[3]),
                          dtype=np.float32)], axis=1)
    elif str_type == "linear":
        inp = np.concatenate([inp * metric, metric], axis=1)
    elif str_type == "softmax":
        inp = np.concatenate([inp * np.exp(metric), np.exp(metric)], axis=1)
    out = _ref_softsplat_sum(inp, flow.astype(np.float32))
    if str_type != "summation":
        norm = out[:, -1:, :, :].copy()
        norm[norm == 0.0] = 1.0
        out = out[:, :-1, :, :] / norm
    return out


if __name__ == "__main__":
    key = jax.random.PRNGKey(0)
    k1, k2, k3 = jax.random.split(key, 3)

    N, C, H, W = 2, 4, 16, 16
    ten_input = jax.random.normal(k1, (N, C, H, W), dtype=jnp.float32)
    ten_flow = 3.0 * jax.random.normal(k2, (N, 2, H, W), dtype=jnp.float32)
    ten_metric = jax.random.normal(k3, (N, 1, H, W), dtype=jnp.float32)

    # 1) softmax mode (metric-weighted splat + fused normalization).
    module = ModuleSoftsplat("softmax")
    out = jax.block_until_ready(module(ten_input, ten_flow, ten_metric))
    ref = _ref_function_softsplat(np.asarray(ten_input), np.asarray(ten_flow),
                                  np.asarray(ten_metric), "softmax")
    np.testing.assert_allclose(np.asarray(out), ref, rtol=1e-4, atol=1e-4)

    # 2) summation mode with non-finite flow entries.
    flow_bad = ten_flow.at[0, 0, 2, 3].set(jnp.nan).at[1, 1, 7, 9].set(jnp.inf)
    out_sum = jax.block_until_ready(
        function_softsplat(ten_input, flow_bad, None, "summation"))
    ref_sum = _ref_function_softsplat(np.asarray(ten_input),
                                      np.asarray(flow_bad), None, "summation")
    np.testing.assert_allclose(np.asarray(out_sum), ref_sum, rtol=1e-4, atol=1e-4)

    # 3) multi-tile banded path (grid (2, 2, band)).
    inp_ext = jnp.concatenate(
        [ten_input * jnp.exp(ten_metric), jnp.exp(ten_metric)], axis=1)
    out_tiled = jax.block_until_ready(
        _softsplat_sum(inp_ext, ten_flow, C, max_tq=128, max_tp=128))
    np.testing.assert_allclose(np.asarray(out_tiled), ref, rtol=1e-4, atol=1e-4)

    # 4) banded skip with an out-of-band (padded) p-step: constant upward flow.
    flow_const = jnp.concatenate(
        [jnp.full((N, 1, H, W), 0.7, jnp.float32),
         jnp.full((N, 1, H, W), -2.3, jnp.float32)], axis=1)
    out_band = jax.block_until_ready(
        _softsplat_sum(inp_ext, flow_const, C, max_tq=128, max_tp=128))
    ref_band = _ref_function_softsplat(np.asarray(ten_input), np.asarray(flow_const),
                                       np.asarray(ten_metric), "softmax")
    np.testing.assert_allclose(np.asarray(out_band), ref_band, rtol=1e-4, atol=1e-4)

    # 5) non-128-divisible spatial size exercises the padded-pixel path.
    H2, W2 = 10, 12
    inp2 = jax.random.normal(k1, (1, 3, H2, W2), dtype=jnp.float32)
    flow2 = 2.0 * jax.random.normal(k2, (1, 2, H2, W2), dtype=jnp.float32)
    out2 = jax.block_until_ready(function_softsplat(inp2, flow2, None, "average"))
    ref2 = _ref_function_softsplat(np.asarray(inp2), np.asarray(flow2), None,
                                   "average")
    np.testing.assert_allclose(np.asarray(out2), ref2, rtol=1e-4, atol=1e-4)

    # 6) optional bf16-weight MXU path (looser tolerance by construction).
    out_bf16 = jax.block_until_ready(
        function_softsplat(ten_input, ten_flow, ten_metric, "softmax",
                           weights_bf16=True))
    np.testing.assert_allclose(np.asarray(out_bf16), ref, rtol=1e-1, atol=1e-1)

    print("KERNEL_OK")
</pallas_src>

<mosaic_0001>
module attributes {stable_mosaic.version = 11 : i64} {
  func.func @_softsplat_kernel(%arg0: i32, %arg1: i32, %arg2: i32, %arg3: memref<2xi32, #tpu.memory_space<smem>>, %arg4: memref<2xi32, #tpu.memory_space<smem>>, %arg5: memref<1x5x256xf32, #tpu.memory_space<vmem>>, %arg6: memref<1x256x2xf32, #tpu.memory_space<vmem>>, %arg7: memref<2x256xf32, #tpu.memory_space<vmem>>, %arg8: memref<1x4x256xf32, #tpu.memory_space<vmem>>, %arg9: memref<5x256xf32, #tpu.memory_space<vmem>>) attributes {dimension_semantics = [#tpu.dimension_semantics<parallel>, #tpu.dimension_semantics<parallel>, #tpu.dimension_semantics<arbitrary>], iteration_bounds = array<i64: 2, 1, 1>, scalar_prefetch = 2 : i64, scratch_operands = 1 : i64, tpu.core_type = #tpu.core_type<tc>, window_params = [{transform_indices = @transform_0, window_bounds = array<i64: 1, 5, 256>}, {transform_indices = @transform_1, window_bounds = array<i64: 1, 256, 2>}, {transform_indices = @transform_2, window_bounds = array<i64: 2, 256>}, {transform_indices = @transform_3, window_bounds = array<i64: 1, 4, 256>}]} {
    %c0_i32 = arith.constant 0 : i32
    %0 = arith.cmpi eq, %arg2, %c0_i32 : i32
    %1 = arith.extui %0 : i1 to i32
    %c0_i32_0 = arith.constant 0 : i32
    %2 = arith.cmpi ne, %1, %c0_i32_0 : i32
    scf.if %2 {
      %cst = arith.constant 0.000000e+00 : f32
      %13 = vector.broadcast %cst : f32 to vector<5x256xf32>
      %c0 = arith.constant 0 : index
      %c0_4 = arith.constant 0 : index
      %14 = vector.load %arg9[%c0, %c0_4] : memref<5x256xf32, #tpu.memory_space<vmem>>, vector<5x256xf32>
      tpu.vector_store %arg9[%c0, %c0_4], %13 {strides = array<i32>} : memref<5x256xf32, #tpu.memory_space<vmem>>, vector<5x256xf32>,
    } else {
    }
    %c1_i32 = arith.constant 1 : i32
    %3 = arith.muli %arg0, %c1_i32 : i32
    %4 = arith.addi %3, %arg1 : i32
    %5 = arith.index_cast %4 : i32 to index
    %6 = memref.load %arg4[%5] : memref<2xi32, #tpu.memory_space<smem>>
    %7 = arith.cmpi slt, %arg2, %6 : i32
    %8 = arith.extui %7 : i1 to i32
    %c0_i32_1 = arith.constant 0 : i32
    %9 = arith.cmpi ne, %8, %c0_i32_1 : i32
    scf.if %9 {
      %c0 = arith.constant 0 : index
      %c0_4 = arith.constant 0 : index
      %c0_5 = arith.constant 0 : index
      %13 = vector.load %arg5[%c0, %c0_4, %c0_5] : memref<1x5x256xf32, #tpu.memory_space<vmem>>, vector<1x5x256xf32>
      %14 = vector.shape_cast %13 : vector<1x5x256xf32> to vector<5x256xf32>
      %c0_6 = arith.constant 0 : index
      %c0_7 = arith.constant 0 : index
      %c0_8 = arith.constant 0 : index
      %15 = vector.load %arg6[%c0_6, %c0_7, %c0_8] : memref<1x256x2xf32, #tpu.memory_space<vmem>>, vector<1x256x2xf32>
      %16 = vector.shape_cast %15 : vector<1x256x2xf32> to vector<256x2xf32>
      %17 = vector.extract_strided_slice %16 {offsets = [0, 0], sizes = [256, 1], strides = [1, 1]} : vector<256x2xf32> to vector<256x1xf32>
      %18 = vector.extract_strided_slice %16 {offsets = [0, 1], sizes = [256, 1], strides = [1, 1]} : vector<256x2xf32> to vector<256x1xf32>
      %c0_9 = arith.constant 0 : index
      %c0_10 = arith.constant 0 : index
      %19 = vector.load %arg7[%c0_9, %c0_10] : memref<2x256xf32, #tpu.memory_space<vmem>>, vector<1x256xf32>
      %c1 = arith.constant 1 : index
      %c0_11 = arith.constant 0 : index
      %20 = vector.load %arg7[%c1, %c0_11] : memref<2x256xf32, #tpu.memory_space<vmem>>, vector<1x256xf32>
      %21 = vector.broadcast %19 : vector<1x256xf32> to vector<256x256xf32>
      %22 = vector.broadcast %17 : vector<256x1xf32> to vector<256x256xf32>
      %23 = arith.subf %21, %22 : vector<256x256xf32>
      %24 = math.absf %23 : vector<256x256xf32>
      %cst = arith.constant 1.000000e+00 : f32
      %25 = vector.broadcast %cst : f32 to vector<256x256xf32>
      %26 = arith.subf %25, %24 : vector<256x256xf32>
      %cst_12 = arith.constant 0.000000e+00 : f32
      %27 = vector.broadcast %cst_12 : f32 to vector<256x256xf32>
      %28 = arith.maximumf %26, %27 : vector<256x256xf32>
      %29 = vector.broadcast %20 : vector<1x256xf32> to vector<256x256xf32>
      %30 = vector.broadcast %18 : vector<256x1xf32> to vector<256x256xf32>
      %31 = arith.subf %29, %30 : vector<256x256xf32>
      %32 = math.absf %31 : vector<256x256xf32>
      %cst_13 = arith.constant 1.000000e+00 : f32
      %33 = vector.broadcast %cst_13 : f32 to vector<256x256xf32>
      %34 = arith.subf %33, %32 : vector<256x256xf32>
      %cst_14 = arith.constant 0.000000e+00 : f32
      %35 = vector.broadcast %cst_14 : f32 to vector<256x256xf32>
      %36 = arith.maximumf %34, %35 : vector<256x256xf32>
      %37 = arith.mulf %28, %36 : vector<256x256xf32>
      %c0_15 = arith.constant 0 : index
      %c0_16 = arith.constant 0 : index
      %38 = vector.load %arg9[%c0_15, %c0_16] : memref<5x256xf32, #tpu.memory_space<vmem>>, vector<5x256xf32>
      %cst_17 = arith.constant dense<0.000000e+00> : vector<5x256xf32>
      %39 = tpu.matmul %14, %37, %cst_17 {dimension_numbers = #tpu.dot_dimension_numbers<[1], [0], [0], [1], [0, 0, 1, 1], [], []>} : vector<5x256xf32>, vector<256x256xf32>, vector<5x256xf32> -> vector<5x256xf32>
      %40 = arith.addf %38, %39 : vector<5x256xf32>
      %c0_18 = arith.constant 0 : index
      %c0_19 = arith.constant 0 : index
      %41 = vector.load %arg9[%c0_18, %c0_19] : memref<5x256xf32, #tpu.memory_space<vmem>>, vector<5x256xf32>
      tpu.vector_store %arg9[%c0_18, %c0_19], %40 {strides = array<i32>} : memref<5x256xf32, #tpu.memory_space<vmem>>, vector<5x256xf32>,
    } else {
    }
    %c0_i32_2 = arith.constant 0 : i32
    %10 = arith.cmpi eq, %arg2, %c0_i32_2 : i32
    %11 = arith.extui %10 : i1 to i32
    %c0_i32_3 = arith.constant 0 : i32
    %12 = arith.cmpi ne, %11, %c0_i32_3 : i32
    scf.if %12 {
      %c0 = arith.constant 0 : index
      %c0_4 = arith.constant 0 : index
      %13 = vector.load %arg9[%c0, %c0_4] : memref<5x256xf32, #tpu.memory_space<vmem>>, vector<5x256xf32>
      %14 = vector.extract_strided_slice %13 {offsets = [4, 0], sizes = [1, 256], strides = [1, 1]} : vector<5x256xf32> to vector<1x256xf32>
      %cst = arith.constant 0.000000e+00 : f32
      %15 = vector.broadcast %cst : f32 to vector<1x256xf32>
      %16 = arith.cmpf oeq, %14, %15 : vector<1x256xf32>
      %cst_5 = arith.constant 1.000000e+00 : f32
      %17 = vector.broadcast %cst_5 : f32 to vector<1x256xf32>
      %18 = arith.select %16, %17, %14 : vector<1x256xi1>, vector<1x256xf32>
      %19 = vector.extract_strided_slice %13 {offsets = [0, 0], sizes = [4, 256], strides = [1, 1]} : vector<5x256xf32> to vector<4x256xf32>
      %20 = vector.broadcast %18 : vector<1x256xf32> to vector<4x256xf32>
      %21 = arith.divf %19, %20 : vector<4x256xf32>
      %c0_6 = arith.constant 0 : index
      %c0_7 = arith.constant 0 : index
      %c0_8 = arith.constant 0 : index
      %22 = vector.load %arg8[%c0_6, %c0_7, %c0_8] : memref<1x4x256xf32, #tpu.memory_space<vmem>>, vector<1x4x256xf32>
      %23 = vector.shape_cast %22 : vector<1x4x256xf32> to vector<4x256xf32>
      %24 = vector.shape_cast %21 : vector<4x256xf32> to vector<1x4x256xf32>
      tpu.vector_store %arg8[%c0_6, %c0_7, %c0_8], %24 {strides = array<i32>} : memref<1x4x256xf32, #tpu.memory_space<vmem>>, vector<1x4x256xf32>,
    } else {
    }
    return
  }
  func.func @transform_0(%arg0: i32, %arg1: i32, %arg2: i32, %arg3: memref<2xi32, #tpu.memory_space<smem>>, %arg4: memref<2xi32, #tpu.memory_space<smem>>) -> (i32, i32, i32) {
    %c1_i32 = arith.constant 1 : i32
    %0 = arith.muli %arg0, %c1_i32 : i32
    %1 = arith.addi %0, %arg1 : i32
    %c1_i32_0 = arith.constant 1 : i32
    %2 = arith.muli %1, %c1_i32_0 : i32
    %3 = arith.addi %2, %arg2 : i32
    %4 = arith.index_cast %3 : i32 to index
    %5 = memref.load %arg3[%4] : memref<2xi32, #tpu.memory_space<smem>>
    %c0_i32 = arith.constant 0 : i32
    %c0_i32_1 = arith.constant 0 : i32
    return %arg0, %c0_i32, %5 : i32, i32, i32
  }
  func.func @transform_1(%arg0: i32, %arg1: i32, %arg2: i32, %arg3: memref<2xi32, #tpu.memory_space<smem>>, %arg4: memref<2xi32, #tpu.memory_space<smem>>) -> (i32, i32, i32) {
    %c1_i32 = arith.constant 1 : i32
    %0 = arith.muli %arg0, %c1_i32 : i32
    %1 = arith.addi %0, %arg1 : i32
    %c1_i32_0 = arith.constant 1 : i32
    %2 = arith.muli %1, %c1_i32_0 : i32
    %3 = arith.addi %2, %arg2 : i32
    %4 = arith.index_cast %3 : i32 to index
    %5 = memref.load %arg3[%4] : memref<2xi32, #tpu.memory_space<smem>>
    %c0_i32 = arith.constant 0 : i32
    %c0_i32_1 = arith.constant 0 : i32
    return %arg0, %5, %c0_i32 : i32, i32, i32
  }
  func.func @transform_2(%arg0: i32, %arg1: i32, %arg2: i32, %arg3: memref<2xi32, #tpu.memory_space<smem>>, %arg4: memref<2xi32, #tpu.memory_space<smem>>) -> (i32, i32) {
    %c0_i32 = arith.constant 0 : i32
    %c0_i32_0 = arith.constant 0 : i32
    return %c0_i32, %arg1 : i32, i32
  }
  func.func @transform_3(%arg0: i32, %arg1: i32, %arg2: i32, %arg3: memref<2xi32, #tpu.memory_space<smem>>, %arg4: memref<2xi32, #tpu.memory_space<smem>>) -> (i32, i32, i32) {
    %c0_i32 = arith.constant 0 : i32
    %c0_i32_0 = arith.constant 0 : i32
    return %arg0, %c0_i32, %arg1 : i32, i32, i32
  }
}

</mosaic_0001>

<bundles_post_ra>
// kernel: tpu_custom_call.1
= control target key start
LH: loop header
LB: loop body
LE: loop exit
PB: predicated region body
PF: predicated region fallthrough
CT: control target
= control target key end

     0   :  { %s1710_s24 = smov [#allocation4]   ;;  %s1711_s25 = smov [#allocation5]   ;;  %s2434_s0 = inlined_call_operand.vmem [shape: s32[2], index: 0, kind: input, shape index: {}]   ;;  %s2435_s2 = inlined_call_operand.vmem [shape: f32[2,5,256], index: 2, kind: input, shape index: {}]   ;;  %s2436_s3 = inlined_call_operand.vmem [shape: f32[2,256,2], index: 3, kind: input, shape index: {}]   ;;  %s2437_s4 = inlined_call_operand.vmem [shape: f32[2,256], index: 4, kind: input, shape index: {}]   ;;  %s2438_s5 = inlined_call_operand.hbm [shape: f32[2,4,256], index: 5, kind: output, shape index: {}]   ;;  %s2439_s1 = inlined_call_operand.vmem [shape: s32[2], index: 1, kind: input, shape index: {}]  }
   0x1   :  { %s11_s20 = sshll.u32 %s2434_s0, 4  ;;  %s16_s23 = sshll.u32 %s2439_s1, 4  ;;  %s12_s20 = int_to_ptr.vmem [resolvable:$true] %s11_s20  ;;  %s17_s23 = int_to_ptr.vmem [resolvable:$true] %s16_s23 }
   0x2   :  { %14 = dma.vmem_to_smem %s12_s20, 16, %s1710_s24, [#allocation3] }
   0x3   :  { %19 = dma.vmem_to_smem %s17_s23, 16, %s1711_s25, [#allocation3] }
   0x4   :  { %1680 = dma.done.wait [#allocation3], 32 }
   0x5   :  { %1681 = vsyncadd [#allocation3], 4294967264 }
   0x6   :  { %22 = sfence }
   0x7   :  { %23 = vsyncpa [#allocation7], 0 }
   0x8   :  { %25 = vsyncpa [#allocation7 + $0x1], 0  ;;  %s1751_s26 = smov 0   ;;  %s1753_s27 = smov 0  }
   0x9   :  { %s1755_s0 = smov 0   ;;  %s1757_s28 = smov 0  }
   0xa   :  { %s1759_s1 = smov 0   ;;  %s1761_s29 = smov 0  }
   0xb LB: > { %2449 = sst [smem:[#allocation10_spill]] %s1704_s1  ;;  %s1510_s30 = sadd.s32 4294967295, %s1708_s29   ;;  %s1708_s29 = sphi %s1761_s29, %s31_s29   ;;  %s1704_s1 = sphi %s1759_s1, %s2513_s1   ;;  %s1700_s28 = sphi %s1757_s28, %s2512_s28   ;;  %s1696_s0 = sphi %s1755_s0, %s2516_s0   ;;  %s1692_s27 = sphi %s1753_s27, %s2515_s27   ;;  %s1688_s26 = sphi %s1751_s26, %s2514_s26  }
   0xc   : > { %s1511_s6 = sadd.s32 4294967294, %s1708_s29   ;;  %s50_s7 = sadd.s32 1, %s1704_s1 }
   0xd   : > { %s153_s8 = sadd.s32 1, %s1696_s0  ;;  %p52_p0 = scmp.ge.s32.totalorder %s50_s7, 2 }
   0xe   : > { %p163_p1 = scmp.ne.s32.totalorder %s1696_s0, %s1692_s27  ;;  %p164_p2 = scmp.eq.s32.totalorder %s1510_s30, 1 }
   0xf   : > { %p169_p3 = scmp.ne.s32.totalorder %s1692_s27, %s1688_s26  ;;  %s2518_s7 = smov (%p52_p0, %s50_s7), 0 }
  0x10   : > { %2450 = sst [smem:[#allocation11_spill]] %s2518_s7  ;;  %p1791_p4 = por %p164_p2, %p163_p1 }
  0x11   : > { %p170_p5 = scmp.eq.s32.totalorder %s1511_s6, 1  ;;  %s148_s10 = ssub.s32 %s1704_s1, %s2518_s7 }
  0x12   : > { %p1515_p6 = scmp.ge.s32.totalorder %s1708_s29, 1  ;;  %p151_p7 = scmp.eq.s32.totalorder %s148_s10, 0 }
  0x13   : > { %p1798_p8 = por %p170_p5, %p169_p3  ;;  %p235_p9 = scmp.lt.s32.totalorder %s1708_s29, 3 }
  0x14   : > { %s1804_s12 = scalar_select %p151_p7, %s1696_s0, %s153_s8  }
  0x15   : > { %p236_p10 = pnand %p1515_p6, %p235_p9 }
  0x16   : > { %s2440_s13 = sand.u32 (!%p236_p10), 1, %s1692_s27   ;;  %s285_s14 = sld [smem:[#allocation4 + %s1700_s28]] (!%p236_p10) }
  0x17   : > { %239 = sbr.rel (%p236_p10) target bundleno = 513 (0x201), region = 32  ;;  %s1810_s15 = sshll.u32 (!%p236_p10), %s2440_s13, 3 }
  0x18   : > { %p287_p11 = scmp.lt.s32.totalorder (!%p236_p10), %s1700_s28, 1  ;;  %s301_s16 = sld [smem:[#allocation4 + %s1700_s28]] (!%p236_p10) }
  0x19   : > { %s329_s18 = sld [smem:[#allocation5 + %s1700_s28]] (!%p236_p10)  ;;  %s282_s1 = scalar_lea.vmem (!%p236_p10), [#allocation6], %s1810_s15 }
  0x1c   : > { %v1712_v0 = vmov 0.0   ;;  %s288_s17 = scalar_select %p287_p11, %s1700_s28, 1 }
  0x1d   : > { %326 = vst [vmem:[#allocation2] sm:$0x1f] %v1712_v0  ;;  %s1517_s19 = sshll.u32 %s285_s14, 1 }
  0x1e   : > { %327 = vst [vmem:[#allocation2 + $0x8] sm:$0x1f] %v1712_v0  ;;  %p289_p12 = scmp.lt.s32.totalorder %s1517_s19, 1  ;;  %s1518_s20 = sshll.u32 %s288_s17, 1 }
  0x1f   : > { %s1520_s21 = sshll.u32 %s301_s16, 5  ;;  %s1521_s6 = sshll.u32 %s288_s17, 5 }
  0x20   : > { %s2520_s19 = smov (!%p289_p12, %s1517_s19), 1  ;;  %p305_p13 = scmp.lt.s32.totalorder %s1520_s21, 31 }
  0x21   : > { %s292_s22 = sadd.s32 %s1518_s20, %s2520_s19  ;;  %p1524_p0 = scmp.le.s32.totalorder %s329_s18, 0 }
  0x22   : > { %s1519_s23 = sshll.u32 %s292_s22, 3  ;;  %s2522_s21 = smov (!%p305_p13, %s1520_s21), 31 }
  0x23   : > { %s1819_s30 = scalar_lea.vmem %s2435_s2, %s1519_s23  ;;  %s308_s8 = sadd.s32 %s1521_s6, %s2522_s21 }
  0x24   : > { %s1522_s10 = sshll.u32 %s308_s8, 3  ;;  %333 = sbr.rel (%p1524_p0) target bundleno = 477 (0x1dd), region = 40 }
  0x25   : > { %s1824_s14 = scalar_lea.vmem %s2436_s3, %s1522_s10 }
  0x29   : > { %v1828_v1 = vld [vmem:[%s1824_s14 + $0x20] sm:$0xff]  ;;  %v1831_v2 = vld [vmem:[%s1824_s14 + $0x10] sm:$0xff]  ;;  %v1713_v4 = vmov 0   ;;  %v1843_v5 = vld [vmem:[%s1824_s14 + $0x28] sm:$0xff]  ;;  %v1714_v31 = vmov 1  }
  0x2a   : > { %v1834_v3 = vld [vmem:[%s1824_s14] sm:$0xff]  ;;  %1594 = vset.pattern.permute.xlu2 %v1713_v4  ;;  %1593 = vset.pattern.permute.xlu1 %v1713_v4  ;;  %v1846_v6 = vld [vmem:[%s1824_s14 + $0x18] sm:$0xff]  ;;  %v1849_v7 = vld [vmem:[%s1824_s14 + $0x8] sm:$0xff] }
  0x2b   : > { %1592 = vset.pattern.permute.xlu0 %v1713_v4  ;;  %398 = vperm.xlu2 %1594, %v1828_v1   ;;  %v1855_v8 = vld [vmem:[%s1824_s14 + $0x40] sm:$0xff]  ;;  %v1858_v9 = vld [vmem:[%s1824_s14 + $0x38] sm:$0xff]  ;;  %v1861_v10 = vld [vmem:[%s1824_s14 + $0x30] sm:$0xff] }
  0x2c   : > { %388 = vperm.xlu1 %1593, %v1831_v2   ;;  %378 = vperm.xlu0 %1592, %v1834_v3   ;;  %v1867_v11 = vld [vmem:[%s1824_s14 + $0x58] sm:$0xff]  ;;  %v1870_v12 = vld [vmem:[%s1824_s14 + $0x50] sm:$0xff]  ;;  %v1873_v13 = vld [vmem:[%s1824_s14 + $0x48] sm:$0xff] }
  0x2d   : > { %v350_v14 = vld [vmem:[%s1824_s14 + $0x70] sm:$0xff]  ;;  %v349_v15 = vld [vmem:[%s1824_s14 + $0x68] sm:$0xff]  ;;  %v348_v16 = vld [vmem:[%s1824_s14 + $0x60] sm:$0xff] }
  0x2e   : > { %v1882_v17 = vld [vmem:[%s1824_s14 + $0x88] sm:$0xff]  ;;  %v1885_v18 = vld [vmem:[%s1824_s14 + $0x80] sm:$0xff]  ;;  %v351_v19 = vld [vmem:[%s1824_s14 + $0x78] sm:$0xff] }
  0x2f   : > { %v1891_v20 = vld [vmem:[%s1824_s14 + $0xa0] sm:$0xff]  ;;  %v1894_v21 = vld [vmem:[%s1824_s14 + $0x98] sm:$0xff]  ;;  %v1897_v22 = vld [vmem:[%s1824_s14 + $0x90] sm:$0xff] }
  0x30   : > { %v359_v23 = vld [vmem:[%s1824_s14 + $0xb8] sm:$0xff]  ;;  %v358_v24 = vld [vmem:[%s1824_s14 + $0xb0] sm:$0xff]  ;;  %v1905_v25 = vld [vmem:[%s1824_s14 + $0xa8] sm:$0xff] }
  0x31   : > { %v362_v26 = vld [vmem:[%s1824_s14 + $0xd0] sm:$0xff]  ;;  %v361_v27 = vld [vmem:[%s1824_s14 + $0xc8] sm:$0xff]  ;;  %v360_v28 = vld [vmem:[%s1824_s14 + $0xc0] sm:$0xff] }
  0x32   : > { %v367_v29 = vld [vmem:[%s1824_s14 + $0xf8] sm:$0xff]  ;;  %v366_v32 = vld [vmem:[%s1824_s14 + $0xf0] sm:$0xff]  ;;  %v365_v33 = vld [vmem:[%s1824_s14 + $0xe8] sm:$0xff] }
  0x33   : > { %403 = vperm.xlu2 %1594, %v1843_v5   ;;  %v363_v30 = vld [vmem:[%s1824_s14 + $0xd8] sm:$0xff]  ;;  %v364_v35 = vld [vmem:[%s1824_s14 + $0xe0] sm:$0xff] }
  0x34   : > { %393 = vperm.xlu1 %1593, %v1846_v6   ;;  %383 = vperm.xlu0 %1592, %v1849_v7   ;;  %v368_v47 = vld [vmem:[%s2437_s4] ss:$2 sm:$0x3] }
  0x35   : > { %v1940_v48 = vperm.slane %v368_v47, 0  ;;  %v1942_v49 = vperm.slane %v368_v47, 1 }
  0x37   : > { %2453 = vst [vmem:[#allocation12_spill] sm:$0xff] %v1940_v48 }
  0x3b   : > { %418 = vperm.xlu2 %1594, %v1855_v8  }
  0x3c   : > { %413 = vperm.xlu1 %1593, %v1858_v9   ;;  %408 = vperm.xlu0 %1592, %v1861_v10  }
  0x43   : > { %433 = vperm.xlu2 %1594, %v1867_v11  }
  0x44   : > { %428 = vperm.xlu1 %1593, %v1870_v12   ;;  %423 = vperm.xlu0 %1592, %v1873_v13  }
  0x4b   : > { %448 = vperm.xlu2 %1594, %v350_v14  }
  0x4c   : > { %443 = vperm.xlu1 %1593, %v349_v15   ;;  %438 = vperm.xlu0 %1592, %v348_v16  }
  0x53   : > { %463 = vperm.xlu2 %1594, %v1882_v17  }
  0x54   : > { %458 = vperm.xlu1 %1593, %v1885_v18   ;;  %453 = vperm.xlu0 %1592, %v351_v19  }
  0x5b   : > { %478 = vperm.xlu2 %1594, %v1891_v20  }
  0x5c   : > { %473 = vperm.xlu1 %1593, %v1894_v21   ;;  %468 = vperm.xlu0 %1592, %v1897_v22  }
  0x63   : > { %493 = vperm.xlu2 %1594, %v359_v23  }
  0x64   : > { %488 = vperm.xlu1 %1593, %v358_v24   ;;  %483 = vperm.xlu0 %1592, %v1905_v25  }
  0x6b   : > { %508 = vperm.xlu2 %1594, %v362_v26  }
  0x6c   : > { %503 = vperm.xlu1 %1593, %v361_v27   ;;  %498 = vperm.xlu0 %1592, %v360_v28  }
  0x73   : > { %1595 = vset.pattern.permute.xlu2 %v1714_v31 }
  0x74   : > { %533 = vperm.xlu1 %1593, %v367_v29   ;;  %513 = vperm.xlu0 %1592, %v363_v30  }
  0x75   : > { %858 = vperm.xlu2 %1595, %v351_v19  }
  0x7c   : > { %528 = vperm.xlu1 %1593, %v366_v32   ;;  %1596 = vset.pattern.permute.xlu0 %v1714_v31 }
  0x7d   : > { %854 = vperm.xlu2 %1595, %v350_v14   ;;  %922 = vperm.xlu0 %1596, %v367_v29  }
  0x84   : > { %1597 = vset.pattern.permute.xlu1 %v1714_v31 }
  0x85   : > { %1598 = vset.pattern.permute.xlu2 %v1713_v4  ;;  %918 = vperm.xlu1 %1597, %v366_v32   ;;  %v399_v34 = vpop.permute.xlu2 %398 }
  0x86   : > { %850 = vperm.xlu0 %1596, %v349_v15   ;;  %523 = vperm.xlu2 %1598, %v365_v33   ;;  %v544_v50 = vsub.f32 %v1940_v48, %v399_v34  ;;  %v545_v52 = vsub.f32 %v1942_v49, %v399_v34 }
  0x88   : > { %v608_v58 = vand.u32 2147483647, %v544_v50  ;;  %v609_v60 = vand.u32 2147483647, %v545_v52 }
  0x8d   : > { %914 = vperm.xlu1 %1597, %v365_v33   ;;  %v404_v36 = vpop.permute.xlu2 %403 }
  0x8e   : > { %846 = vperm.xlu0 %1596, %v348_v16   ;;  %518 = vperm.xlu2 %1598, %v364_v35   ;;  %v546_v55 = vsub.f32 %v1940_v48, %v404_v36  ;;  %v547_v56 = vsub.f32 %v1942_v49, %v404_v36 }
  0x90   : > { %v610_v61 = vand.u32 2147483647, %v546_v55  ;;  %v611_v62 = vand.u32 2147483647, %v547_v56 }
  0x92   : > { %v674_v15 = vsub.f32 1.0, %v610_v61  ;;  %v675_v16 = vsub.f32 1.0, %v611_v62 }
  0x94   : > { %v1985_v32 = vmax.f32 %v675_v16, 0.0 }
  0x95   : > { %910 = vperm.xlu1 %1597, %v364_v35   ;;  %v419_v37 = vpop.permute.xlu2 %418 }
  0x96   : > { %906 = vperm.xlu0 %1596, %v363_v30   ;;  %1599 = vset.pattern.permute.xlu2 %v1714_v31  ;;  %v552_v57 = vsub.f32 %v1940_v48, %v419_v37  ;;  %v553_v59 = vsub.f32 %v1942_v49, %v419_v37  ;;  %v1983_v31 = vmax.f32 %v674_v15, 0.0  ;;  %2456 = vst [vmem:[#allocation15_spill] sm:$0xff] %v1985_v32 }
  0x97   : > { %842 = vperm.xlu2 %1599, %v1867_v11  }
  0x98   : > { %v616_v4 = vand.u32 2147483647, %v552_v57 }
  0x9d   : > { %838 = vperm.xlu1 %1597, %v1870_v12   ;;  %v434_v38 = vpop.permute.xlu2 %433  ;;  %v673_v12 = vsub.f32 1.0, %v609_v60 }
  0x9e   : > { %834 = vperm.xlu0 %1596, %v1873_v13   ;;  %v389_v39 = vpop.permute.xlu1 %388  ;;  %v1920_v40 = vpop.permute.xlu0 %378  ;;  %v558_v63 = vsub.f32 %v1940_v48, %v434_v38  ;;  %v559_v0 = vsub.f32 %v1942_v49, %v434_v38 }
  0x9f   : > { %902 = vperm.xlu2 %1599, %v362_v26   ;;  %v541_v11 = vsub.f32 %v1942_v49, %v389_v39  ;;  %v537_v29 = vsub.f32 %v1942_v49, %v1920_v40 }
  0xa0   : > { %v622_v19 = vand.u32 2147483647, %v558_v63 }
  0xa1   : > { %v2002_v52 = vand.u32 2147483647, %v537_v29 }
  0xa2   : > { %v686_v33 = vsub.f32 1.0, %v622_v19 }
  0xa3   : > { %2458 = vst [vmem:[#allocation17_spill] sm:$0xff] %v2002_v52 }
  0xa5   : > { %898 = vperm.xlu1 %1597, %v361_v27   ;;  %v1922_v41 = vpop.permute.xlu2 %448  ;;  %v605_v27 = vand.u32 2147483647, %v541_v11 }
  0xa6   : > { %894 = vperm.xlu0 %1596, %v360_v28   ;;  %v1924_v42 = vpop.permute.xlu1 %393  ;;  %v1926_v43 = vpop.permute.xlu0 %383  ;;  %v536_v28 = vsub.f32 %v1940_v48, %v1920_v40  ;;  %v564_v30 = vsub.f32 %v1940_v48, %v1922_v41 }
  0xa7   : > { %830 = vperm.xlu2 %1599, %v1855_v8   ;;  %v540_v8 = vsub.f32 %v1940_v48, %v389_v39  ;;  %v542_v37 = vsub.f32 %v1940_v48, %v1924_v42  ;;  %v543_v38 = vsub.f32 %v1942_v49, %v1924_v42  ;;  %v669_v40 = vsub.f32 1.0, %v605_v27 }
  0xa8   : > { %v1995_v47 = vand.u32 2147483647, %v536_v28  ;;  %v628_v55 = vand.u32 2147483647, %v564_v30  ;;  %v539_v60 = vsub.f32 %v1942_v49, %v1926_v43 }
  0xa9   : > { %v606_v62 = vand.u32 2147483647, %v542_v37  ;;  %v607_v63 = vand.u32 2147483647, %v543_v38 }
  0xaa   : > { %2457 = vst [vmem:[#allocation16_spill] sm:$0xff] %v1995_v47 }
  0xab   : > { %v671_v27 = vsub.f32 1.0, %v607_v63 }
  0xad   : > { %826 = vperm.xlu1 %1597, %v1858_v9   ;;  %v1930_v44 = vpop.permute.xlu2 %463  ;;  %v672_v9 = vsub.f32 1.0, %v608_v58  ;;  %v2007_v58 = vmax.f32 %v686_v33, 0.0 }
  0xae   : > { %822 = vperm.xlu0 %1596, %v1861_v10   ;;  %v1933_v45 = vpop.permute.xlu1 %413  ;;  %v1935_v46 = vpop.permute.xlu0 %408  ;;  %v617_v10 = vand.u32 2147483647, %v553_v59 }
  0xaf   : > { %890 = vperm.xlu2 %1599, %v359_v23   ;;  %v623_v23 = vand.u32 2147483647, %v559_v0  ;;  %v1971_v26 = vmax.f32 %v672_v9, 0.0  ;;  %v2020_v0 = vmax.f32 %v669_v40, 0.0  ;;  %v692_v9 = vsub.f32 1.0, %v628_v55 }
  0xb0   : > { %v551_v15 = vsub.f32 %v1942_v49, %v1933_v45  ;;  %v548_v16 = vsub.f32 %v1940_v48, %v1935_v46 }
  0xb1   : > { %2454 = vst [vmem:[#allocation13_spill] sm:$0xff] %v1971_v26  ;;  %v687_v34 = vsub.f32 1.0, %v623_v23  ;;  %v549_v23 = vsub.f32 %v1942_v49, %v1935_v46  ;;  %v2045_v30 = vmax.f32 %v692_v9, 0.0 }
  0xb2   : > { %2461 = vst [vmem:[#allocation20_spill] sm:$0xff] %v2020_v0  ;;  %v615_v38 = vand.u32 2147483647, %v551_v15  ;;  %v2055_v40 = vand.u32 2147483647, %v548_v16 }
  0xb3   : > { %v2009_v59 = vmax.f32 %v687_v34, 0.0  ;;  %v2058_v55 = vand.u32 2147483647, %v549_v23 }
  0xb4   : > { %v679_v9 = vsub.f32 1.0, %v615_v38 }
  0xb5   : > { %886 = vperm.xlu1 %1597, %v358_v24   ;;  %v1945_v51 = vpop.permute.xlu2 %478  ;;  %v680_v24 = vsub.f32 1.0, %v616_v4 }
  0xb6   : > { %882 = vperm.xlu0 %1596, %v1905_v25   ;;  %v1949_v53 = vpop.permute.xlu1 %428  ;;  %v1951_v54 = vpop.permute.xlu0 %423  ;;  %v604_v25 = vand.u32 2147483647, %v540_v8  ;;  %v550_v8 = vsub.f32 %v1940_v48, %v1933_v45 }
  0xb7   : > { %818 = vperm.xlu2 %1599, %v1843_v5   ;;  %v1987_v35 = vmax.f32 %v680_v24, 0.0  ;;  %v556_v23 = vsub.f32 %v1940_v48, %v1949_v53 }
  0xb8   : > { %v668_v36 = vsub.f32 1.0, %v604_v25  ;;  %v614_v29 = vand.u32 2147483647, %v550_v8 }
  0xba   : > { %v2016_v61 = vmax.f32 %v668_v36, 0.0  ;;  %v620_v36 = vand.u32 2147483647, %v556_v23 }
  0xbc   : > { %2460 = vst [vmem:[#allocation19_spill] sm:$0xff] %v2016_v61 }
  0xbd   : > { %814 = vperm.xlu1 %1597, %v1828_v1   ;;  %v1963_v5 = vpop.permute.xlu2 %493  ;;  %v681_v1 = vsub.f32 1.0, %v617_v10 }
  0xbe   : > { %810 = vperm.xlu0 %1596, %v1846_v6   ;;  %v1966_v13 = vpop.permute.xlu1 %443  ;;  %v1968_v14 = vpop.permute.xlu0 %438  ;;  %v1975_v6 = vmax.f32 %v673_v12, 0.0  ;;  %v2031_v12 = vand.u32 2147483647, %v539_v60  ;;  %v2064_v60 = vmax.f32 %v671_v27, 0.0  ;;  %v554_v27 = vsub.f32 %v1940_v48, %v1951_v54 }
  0xbf   : > { %878 = vperm.xlu2 %1599, %v1891_v20   ;;  %v565_v20 = vsub.f32 %v1942_v49, %v1922_v41  ;;  %v1993_v39 = vmax.f32 %v681_v1, 0.0  ;;  %v538_v41 = vsub.f32 %v1940_v48, %v1926_v43  ;;  %v1525_v43 = vld [vmem:[%s2437_s4 + $0x1] ss:$2 sm:$0x3]  ;;  %v670_v1 = vsub.f32 1.0, %v606_v62 }
  0xc0   : > { %2455 = vst [vmem:[#allocation14_spill] sm:$0xff] %v1975_v6  ;;  %v2039_v24 = vperm.slane %v1525_v43, 0  ;;  %v2041_v25 = vperm.slane %v1525_v43, 1  ;;  %v576_v62 = vsub.f32 %v1940_v48, %v1945_v51  ;;  %v563_v23 = vsub.f32 %v1942_v49, %v1966_v13 }
  0xc1   : > { %v629_v56 = vand.u32 2147483647, %v565_v20  ;;  %v2022_v4 = vand.u32 2147483647, %v538_v41  ;;  %2463 = vst [vmem:[#allocation22_spill] sm:$0xff] %v2031_v12 }
  0xc2   : > { %2465 = vst [vmem:[#allocation24_spill] sm:$0xff] %v2064_v60 }
  0xc3   : > { %2462 = vst [vmem:[#allocation21_spill] sm:$0xff] %v2022_v4 }
  0xc5   : > { %874 = vperm.xlu1 %1597, %v1894_v21   ;;  %v2000_v50 = vpop.permute.xlu2 %508  ;;  %v570_v21 = vsub.f32 %v1940_v48, %v1930_v44 }
  0xc6   : > { %870 = vperm.xlu0 %1596, %v1897_v22   ;;  %v2005_v57 = vpop.permute.xlu1 %458  ;;  %v454_v42 = vpop.permute.xlu0 %453  ;;  %v571_v22 = vsub.f32 %v1942_v49, %v1930_v44 }
  0xc7   : > { %2459 = vst [vmem:[#allocation18_spill] sm:$0xff] %v2005_v57  ;;  %806 = vperm.xlu2 %1599, %v1831_v2   ;;  %v693_v2 = vsub.f32 1.0, %v629_v56  ;;  %v566_v10 = vsub.f32 %v1940_v48, %v454_v42  ;;  %v567_v11 = vsub.f32 %v1942_v49, %v454_v42  ;;  %v634_v44 = vand.u32 2147483647, %v570_v21 }
  0xc8   : > { %v635_v19 = vand.u32 2147483647, %v571_v22  ;;  %v2062_v42 = vmax.f32 %v670_v1, 0.0  ;;  %v678_v21 = vsub.f32 1.0, %v614_v29  ;;  %v557_v1 = vsub.f32 %v1942_v49, %v1949_v53 }
  0xc9   : > { %v2047_v45 = vmax.f32 %v693_v2, 0.0  ;;  %v630_v20 = vand.u32 2147483647, %v566_v10  ;;  %v631_v33 = vand.u32 2147483647, %v567_v11  ;;  %v698_v37 = vsub.f32 1.0, %v634_v44 }
  0xca   : > { %2464 = vst [vmem:[#allocation23_spill] sm:$0xff] %v2062_v42  ;;  %v577_v10 = vsub.f32 %v1942_v49, %v1945_v51  ;;  %v555_v53 = vsub.f32 %v1942_v49, %v1951_v54 }
  0xcb   : > { %v694_v8 = vsub.f32 1.0, %v630_v20  ;;  %v695_v43 = vsub.f32 1.0, %v631_v33 }
  0xcd   : > { %802 = vperm.xlu1 %1597, %v1849_v7   ;;  %v699_v7 = vsub.f32 1.0, %v635_v19  ;;  %v640_v19 = vand.u32 2147483647, %v576_v62  ;;  %v758_v20 = vmax.f32 %v694_v8, 0.0  ;;  %v621_v8 = vand.u32 2147483647, %v557_v1 }
  0xce   : > { %798 = vperm.xlu0 %1596, %v1834_v3   ;;  %v2050_v46 = vpop.permute.xlu1 %473  ;;  %v2052_v34 = vpop.permute.xlu0 %468  ;;  %v560_v1 = vsub.f32 %v1940_v48, %v1968_v14 }
  0xcf   : > { %v859_v41 = vpop.permute.xlu2 %858  ;;  %866 = vperm.xlu2 %1599, %v1882_v17   ;;  %v2068_v17 = vmax.f32 %v698_v37, 0.0  ;;  %v2073_v11 = vmax.f32 %v699_v7, 0.0  ;;  %v759_v37 = vmax.f32 %v695_v43, 0.0  ;;  %v2089_v7 = vmax.f32 %v679_v9, 0.0 }
  0xd0   : > { %v955_v56 = vsub.f32 %v2039_v24, %v859_v41  ;;  %v956_v3 = vsub.f32 %v2041_v25, %v859_v41  ;;  %v2087_v41 = vmax.f32 %v678_v21, 0.0  ;;  %v582_v21 = vsub.f32 %v1940_v48, %v1963_v5 }
  0xd1   : > { %2466 = vst [vmem:[#allocation25_spill] sm:$0xff] %v2068_v17  ;;  %v704_v43 = vsub.f32 1.0, %v640_v19  ;;  %v583_v9 = vsub.f32 %v1942_v49, %v1963_v5  ;;  %v561_v19 = vsub.f32 %v1942_v49, %v1968_v14  ;;  %v627_v14 = vand.u32 2147483647, %v563_v23 }
  0xd2   : > { %v1019_v63 = vand.u32 2147483647, %v955_v56  ;;  %v1020_v22 = vand.u32 2147483647, %v956_v3  ;;  %2467 = vst [vmem:[#allocation26_spill] sm:$0xff] %v2073_v11 }
  0xd3   : > { %v641_v56 = vand.u32 2147483647, %v577_v10 }
  0xd4   : > { %v1083_v15 = vsub.f32 1.0, %v1019_v63  ;;  %v1084_v16 = vsub.f32 1.0, %v1020_v22 }
  0xd5   : > { %862 = vperm.xlu1 %1597, %v1885_v18   ;;  %v705_v54 = vsub.f32 1.0, %v641_v56  ;;  %v589_v56 = vsub.f32 %v1942_v49, %v2000_v50 }
  0xd6   : > { %v2083_v29 = vpop.permute.xlu1 %488  ;;  %v2085_v51 = vpop.permute.xlu0 %483  ;;  %v1147_v33 = vmax.f32 %v1083_v15, 0.0  ;;  %v1148_v38 = vmax.f32 %v1084_v16, 0.0  ;;  %v618_v15 = vand.u32 2147483647, %v554_v27  ;;  %v619_v27 = vand.u32 2147483647, %v555_v53 }
  0xd7   : > { %v855_v3 = vpop.permute.xlu2 %854 }
  0xd8   : > { %v953_v62 = vsub.f32 %v2039_v24, %v855_v3  ;;  %v954_v18 = vsub.f32 %v2041_v25, %v855_v3  ;;  %v1211_v63 = vmul.f32 %v1147_v33, %v758_v20  ;;  %v1212_v22 = vmul.f32 %v1148_v38, %v759_v37 }
  0xd9   : > { %v562_v3 = vsub.f32 %v1940_v48, %v1966_v13  ;;  %v684_v33 = vsub.f32 1.0, %v620_v36  ;;  %v646_v37 = vand.u32 2147483647, %v582_v21  ;;  %v588_v38 = vsub.f32 %v1940_v48, %v2000_v50 }
  0xda   : > { %v1017_v10 = vand.u32 2147483647, %v953_v62  ;;  %v1018_v16 = vand.u32 2147483647, %v954_v18  ;;  %1247 = vmatpush.msra.mxu0 %v1211_v63  ;;  %1287 = vmatpush.msra.mxu2 %v1212_v22  ;;  %v685_v62 = vsub.f32 1.0, %v621_v8  ;;  %v683_v50 = vsub.f32 1.0, %v619_v27 }
  0xdb   : > { %v647_v18 = vand.u32 2147483647, %v583_v9  ;;  %v626_v28 = vand.u32 2147483647, %v562_v3  ;;  %v625_v36 = vand.u32 2147483647, %v561_v19 }
  0xdc   : > { %v1081_v20 = vsub.f32 1.0, %v1017_v10  ;;  %v1082_v5 = vsub.f32 1.0, %v1018_v16  ;;  %v624_v10 = vand.u32 2147483647, %v560_v1  ;;  %v682_v16 = vsub.f32 1.0, %v618_v15 }
  0xdd   : > { %v710_v8 = vsub.f32 1.0, %v646_v37  ;;  %v652_v9 = vand.u32 2147483647, %v588_v38  ;;  %v2469_v3 = vsub.f32 1.0, %v2058_v55  ;;  %v2127_v15 = vmax.f32 %v704_v43, 0.0 }
  0xde   : > { %v1145_v13 = vmax.f32 %v1081_v20, 0.0  ;;  %v1146_v63 = vmax.f32 %v1082_v5, 0.0  ;;  %v2111_v22 = vpop.permute.xlu1 %503  ;;  %v2113_v53 = vpop.permute.xlu0 %498  ;;  %v653_v20 = vand.u32 2147483647, %v589_v56  ;;  %v2468_v5 = vsub.f32 1.0, %v2055_v40 }
  0xdf   : > { %v2125_v23 = vmax.f32 %v2469_v3, 0.0  ;;  %2470 = vst [vmem:[#allocation27_spill] sm:$0xff] %v2127_v15  ;;  %v711_v1 = vsub.f32 1.0, %v647_v18  ;;  %v691_v27 = vsub.f32 1.0, %v627_v14  ;;  %v688_v19 = vsub.f32 1.0, %v624_v10 }
  0xe0   : > { %v2115_v21 = vpop.permute.xlu2 %523  ;;  %v1209_v44 = vmul.f32 %v1145_v13, %v2045_v30  ;;  %v1210_v2 = vmul.f32 %v1146_v63, %v2047_v45  ;;  %v2121_v12 = vmax.f32 %v2468_v5, 0.0  ;;  %v2129_v30 = vmax.f32 %v705_v54, 0.0 }
  0xe1   : > { %v690_v45 = vsub.f32 1.0, %v626_v28  ;;  %v2131_v37 = vmax.f32 %v684_v33, 0.0  ;;  %v2133_v38 = vmax.f32 %v685_v62, 0.0  ;;  %v2135_v40 = vmax.f32 %v682_v16, 0.0 }
  0xe2   : > { %1248 = vmatpush.msra.mxu0 %v1209_v44  ;;  %1288 = vmatpush.msra.mxu2 %v1210_v2  ;;  %2471 = vst [vmem:[#allocation28_spill] sm:$0xff] %v2129_v30  ;;  %v689_v56 = vsub.f32 1.0, %v625_v36  ;;  %v2137_v55 = vmax.f32 %v683_v50, 0.0  ;;  %v2139_v13 = vmax.f32 %v710_v8, 0.0  ;;  %v716_v43 = vsub.f32 1.0, %v652_v9 }
  0xe3   : > { %v717_v18 = vsub.f32 1.0, %v653_v20  ;;  %v2141_v44 = vmax.f32 %v711_v1, 0.0  ;;  %v580_v28 = vsub.f32 %v1940_v48, %v2083_v29  ;;  %v581_v2 = vsub.f32 %v1942_v49, %v2083_v29 }
  0xe4   : > { %v578_v54 = vsub.f32 %v1940_v48, %v2085_v51  ;;  %v2151_v63 = vmax.f32 %v690_v45, 0.0  ;;  %v2153_v14 = vmax.f32 %v691_v27, 0.0  ;;  %v2155_v10 = vmax.f32 %v688_v19, 0.0 }
  0xe5   : > { %v574_v16 = vsub.f32 %v1940_v48, %v2050_v46  ;;  %v2159_v36 = vmax.f32 %v689_v56, 0.0  ;;  %v575_v29 = vsub.f32 %v1942_v49, %v2050_v46  ;;  %v572_v50 = vsub.f32 %v1940_v48, %v2052_v34 }
  0xe6   : > { %v534_v33 = vpop.permute.xlu1 %533  ;;  %v2149_v62 = vpop.permute.xlu0 %513  ;;  %v579_v8 = vsub.f32 %v1942_v49, %v2085_v51  ;;  %v2169_v20 = vmax.f32 %v716_v43, 0.0  ;;  %v2171_v5 = vmax.f32 %v717_v18, 0.0  ;;  %v586_v3 = vsub.f32 %v1940_v48, %v2111_v22 }
  0xe7   : > { %v594_v1 = vsub.f32 %v1940_v48, %v2115_v21  ;;  %v573_v46 = vsub.f32 %v1942_v49, %v2052_v34  ;;  %v2179_v45 = vand.u32 2147483647, %v580_v28  ;;  %v2181_v27 = vand.u32 2147483647, %v581_v2 }
  0xe8   : > { %v2167_v9 = vpop.permute.xlu2 %518  ;;  %v2183_v51 = vand.u32 2147483647, %v578_v54  ;;  %v2185_v19 = vand.u32 2147483647, %v574_v16  ;;  %v587_v56 = vsub.f32 %v1942_v49, %v2111_v22  ;;  %v598_v43 = vsub.f32 %v1940_v48, %v534_v33 }
  0xe9   : > { %v599_v18 = vsub.f32 %v1942_v49, %v534_v33  ;;  %v2191_v4 = vand.u32 2147483647, %v575_v29  ;;  %v2193_v11 = vand.u32 2147483647, %v572_v50  ;;  %v2195_v34 = vand.u32 2147483647, %v579_v8 }
  0xea   : > { %2472 = vst [vmem:[#allocation29_spill] sm:$0xff] %v2183_v51  ;;  %v584_v28 = vsub.f32 %v1940_v48, %v2113_v53  ;;  %v2199_v2 = vand.u32 2147483647, %v586_v3  ;;  %v585_v54 = vsub.f32 %v1942_v49, %v2113_v53  ;;  %v595_v22 = vsub.f32 %v1942_v49, %v2115_v21 }
  0xeb   : > { %2473 = vst [vmem:[#allocation30_spill] sm:$0xff] %v2185_v19  ;;  %v658_v16 = vand.u32 2147483647, %v594_v1  ;;  %v2205_v17 = vand.u32 2147483647, %v573_v46 }
  0xec   : > { %2474 = vst [vmem:[#allocation31_spill] sm:$0xff] %v2191_v4  ;;  %v2210_v52 = vand.u32 2147483647, %v587_v56  ;;  %v662_v3 = vand.u32 2147483647, %v598_v43  ;;  %v590_v56 = vsub.f32 %v1940_v48, %v2149_v62 }
  0xed   : > { %2475 = vst [vmem:[#allocation32_spill] sm:$0xff] %v2193_v11  ;;  %v663_v47 = vand.u32 2147483647, %v599_v18  ;;  %v2213_v0 = vand.u32 2147483647, %v584_v28  ;;  %v722_v50 = vsub.f32 1.0, %v658_v16 }
  0xee   : > { %2476 = vst [vmem:[#allocation33_spill] sm:$0xff] %v2195_v34  ;;  %v529_v8 = vpop.permute.xlu1 %528  ;;  %v2218_v33 = vand.u32 2147483647, %v585_v54  ;;  %v659_v29 = vand.u32 2147483647, %v595_v22  ;;  %v726_v42 = vsub.f32 1.0, %v662_v3 }
  0xef   : > { %2477 = vst [vmem:[#allocation34_spill] sm:$0xff] %v2205_v17  ;;  %v923_v57 = vpop.permute.xlu0 %922  ;;  %v596_v43 = vsub.f32 %v1940_v48, %v529_v8  ;;  %v597_v60 = vsub.f32 %v1942_v49, %v529_v8  ;;  %v2228_v6 = vmax.f32 %v722_v50, 0.0 }
  0xf0   : > { %v987_v21 = vsub.f32 %v2039_v24, %v923_v57  ;;  %v988_v1 = vsub.f32 %v2041_v25, %v923_v57  ;;  %v727_v57 = vsub.f32 1.0, %v663_v47  ;;  %v723_v11 = vsub.f32 1.0, %v659_v29 }
  0xf1   : > { %v843_v61 = vpop.permute.xlu2 %842  ;;  %v660_v28 = vand.u32 2147483647, %v596_v43  ;;  %v592_v47 = vsub.f32 %v1940_v48, %v2167_v9  ;;  %v661_v46 = vand.u32 2147483647, %v597_v60  ;;  %v593_v60 = vsub.f32 %v1942_v49, %v2167_v9 }
  0xf2   : > { %v1051_v18 = vand.u32 2147483647, %v987_v21  ;;  %v1052_v53 = vand.u32 2147483647, %v988_v1  ;;  %v947_v54 = vsub.f32 %v2039_v24, %v843_v61  ;;  %v591_v21 = vsub.f32 %v1942_v49, %v2149_v62 }
  0xf3   : > { %v2232_v1 = vand.u32 2147483647, %v590_v56  ;;  %v948_v17 = vsub.f32 %v2041_v25, %v843_v61  ;;  %v2243_v61 = vmax.f32 %v723_v11, 0.0 }
  0xf4   : > { %v1115_v22 = vsub.f32 1.0, %v1051_v18  ;;  %v1116_v16 = vsub.f32 1.0, %v1052_v53  ;;  %v790_v18 = vmax.f32 %v726_v42, 0.0  ;;  %v791_v53 = vmax.f32 %v727_v57, 0.0 }
  0xf5   : > { %v1011_v29 = vand.u32 2147483647, %v947_v54  ;;  %v724_v42 = vsub.f32 1.0, %v660_v28  ;;  %v725_v54 = vsub.f32 1.0, %v661_v46  ;;  %v2245_v32 = vand.u32 2147483647, %v591_v21 }
  0xf6   : > { %v1179_v8 = vmax.f32 %v1115_v22, 0.0  ;;  %v1180_v3 = vmax.f32 %v1116_v16, 0.0  ;;  %v2248_v28 = vand.u32 2147483647, %v592_v47 }
  0xf7   : > { %v919_v26 = vpop.permute.xlu1 %918  ;;  %v1075_v34 = vsub.f32 1.0, %v1011_v29  ;;  %v788_v11 = vmax.f32 %v724_v42, 0.0 }
  0xf8   : > { %v985_v50 = vsub.f32 %v2039_v24, %v919_v26  ;;  %v986_v30 = vsub.f32 %v2041_v25, %v919_v26  ;;  %v851_v62 = vpop.permute.xlu0 %850  ;;  %v1243_v16 = vmul.f32 %v1179_v8, %v790_v18  ;;  %v1244_v15 = vmul.f32 %v1180_v3, %v791_v53 }
  0xf9   : > { %v951_v56 = vsub.f32 %v2039_v24, %v851_v62  ;;  %v952_v43 = vsub.f32 %v2041_v25, %v851_v62  ;;  %v903_v22 = vpop.permute.xlu2 %902  ;;  %v1012_v26 = vand.u32 2147483647, %v948_v17  ;;  %v718_v8 = vsub.f32 1.0, %v2232_v1 }
  0xfa   : > { %v1049_v57 = vand.u32 2147483647, %v985_v50  ;;  %v1050_v48 = vand.u32 2147483647, %v986_v30  ;;  %1267 = vmatpush.msra.mxu1 %v1243_v16  ;;  %1307 = vmatpush.msra.mxu3 %v1244_v15  ;;  %v2250_v30 = vand.u32 2147483647, %v593_v60  ;;  %v977_v16 = vsub.f32 %v2039_v24, %v903_v22 }
  0xfb   : > { %v1015_v4 = vand.u32 2147483647, %v951_v56  ;;  %v1016_v19 = vand.u32 2147483647, %v952_v43  ;;  %v789_v18 = vmax.f32 %v725_v54, 0.0  ;;  %v1076_v29 = vsub.f32 1.0, %v1012_v26 }
  0xfc   : > { %v1113_v51 = vsub.f32 1.0, %v1049_v57  ;;  %v1114_v62 = vsub.f32 1.0, %v1050_v48  ;;  %v1139_v56 = vmax.f32 %v1075_v34, 0.0  ;;  %v978_v60 = vsub.f32 %v2041_v25, %v903_v22 }
  0xfd   : > { %v1079_v3 = vsub.f32 1.0, %v1015_v4  ;;  %v1080_v9 = vsub.f32 1.0, %v1016_v19 }
  0xfe   : > { %v1177_v46 = vmax.f32 %v1113_v51, 0.0  ;;  %v1178_v53 = vmax.f32 %v1114_v62, 0.0 }
  0xff   : > { %v1143_v50 = vmax.f32 %v1079_v3, 0.0  ;;  %v1144_v15 = vmax.f32 %v1080_v9, 0.0  ;;  %v915_v17 = vpop.permute.xlu1 %914  ;;  %v719_v3 = vsub.f32 1.0, %v2245_v32  ;;  %v2261_v9 = vmax.f32 %v718_v8, 0.0 }
 0x100   : > { %v983_v48 = vsub.f32 %v2039_v24, %v915_v17  ;;  %v984_v21 = vsub.f32 %v2041_v25, %v915_v17  ;;  %v847_v1 = vpop.permute.xlu0 %846  ;;  %v1241_v51 = vmul.f32 %v1177_v46, %v788_v11  ;;  %v1242_v62 = vmul.f32 %v1178_v53, %v789_v18 }
 0x101   : > { %v949_v4 = vsub.f32 %v2039_v24, %v847_v1  ;;  %v950_v19 = vsub.f32 %v2041_v25, %v847_v1  ;;  %v831_v47 = vpop.permute.xlu2 %830  ;;  %v1207_v43 = vmul.f32 %v1143_v50, %v2151_v63  ;;  %v1208_v26 = vmul.f32 %v1144_v15, %v2153_v14 }
 0x102   : > { %v1047_v42 = vand.u32 2147483647, %v983_v48  ;;  %v1048_v57 = vand.u32 2147483647, %v984_v21  ;;  %1268 = vmatpush.msra.mxu1 %v1241_v51  ;;  %v720_v11 = vsub.f32 1.0, %v2248_v28  ;;  %v721_v46 = vsub.f32 1.0, %v2250_v30  ;;  %1308 = vmatpush.msra.mxu3 %v1242_v62 }
 0x103   : > { %v1013_v34 = vand.u32 2147483647, %v949_v4  ;;  %v1014_v54 = vand.u32 2147483647, %v950_v19  ;;  %1249 = vmatpush.msra.mxu0 %v1207_v43  ;;  %1289 = vmatpush.msra.mxu2 %v1208_v26  ;;  %v1140_v48 = vmax.f32 %v1076_v29, 0.0  ;;  %v1203_v8 = vmul.f32 %v1139_v56, %v2007_v58 }
 0x104   : > { %v1111_v17 = vsub.f32 1.0, %v1047_v42  ;;  %v1112_v63 = vsub.f32 1.0, %v1048_v57  ;;  %v1041_v21 = vand.u32 2147483647, %v977_v16  ;;  %v1042_v1 = vand.u32 2147483647, %v978_v60 }
 0x105   : > { %v1077_v22 = vsub.f32 1.0, %v1013_v34  ;;  %v1078_v50 = vsub.f32 1.0, %v1014_v54  ;;  %v941_v15 = vsub.f32 %v2039_v24, %v831_v47  ;;  %v942_v28 = vsub.f32 %v2041_v25, %v831_v47 }
 0x106   : > { %v1175_v4 = vmax.f32 %v1111_v17, 0.0  ;;  %v1176_v14 = vmax.f32 %v1112_v63, 0.0  ;;  %v1105_v58 = vsub.f32 1.0, %v1041_v21  ;;  %v1106_v56 = vsub.f32 1.0, %v1042_v1 }
 0x107   : > { %v1141_v18 = vmax.f32 %v1077_v22, 0.0  ;;  %v1142_v53 = vmax.f32 %v1078_v50, 0.0  ;;  %v911_v32 = vpop.permute.xlu1 %910  ;;  %v1005_v17 = vand.u32 2147483647, %v941_v15  ;;  %v1006_v63 = vand.u32 2147483647, %v942_v28 }
 0x108   : > { %v981_v30 = vsub.f32 %v2039_v24, %v911_v32  ;;  %v982_v19 = vsub.f32 %v2041_v25, %v911_v32  ;;  %v907_v43 = vpop.permute.xlu0 %906  ;;  %v1239_v42 = vmul.f32 %v1175_v4, %v2228_v6  ;;  %v1240_v62 = vmul.f32 %v1176_v14, %v2243_v61 }
 0x109   : > { %v979_v29 = vsub.f32 %v2039_v24, %v907_v43  ;;  %v980_v51 = vsub.f32 %v2041_v25, %v907_v43  ;;  %v2272_v16 = vpop.permute.xlu2 %890  ;;  %v1205_v60 = vmul.f32 %v1141_v18, %v2155_v10  ;;  %v1206_v26 = vmul.f32 %v1142_v53, %v2159_v36 }
 0x10a   : > { %v1045_v57 = vand.u32 2147483647, %v981_v30  ;;  %v1046_v34 = vand.u32 2147483647, %v982_v19  ;;  %1269 = vmatpush.msra.mxu1 %v1239_v42  ;;  %v783_v32 = vmax.f32 %v719_v3, 0.0  ;;  %1309 = vmatpush.msra.mxu3 %v1240_v62  ;;  %v1204_v6 = vmul.f32 %v1140_v48, %v2009_v59 }
 0x10b   : > { %v1043_v47 = vand.u32 2147483647, %v979_v29  ;;  %v1044_v54 = vand.u32 2147483647, %v980_v51  ;;  %1250 = vmatpush.msra.mxu0 %v1205_v60  ;;  %1290 = vmatpush.msra.mxu2 %v1206_v26  ;;  %v784_v21 = vmax.f32 %v720_v11, 0.0  ;;  %v785_v1 = vmax.f32 %v721_v46, 0.0 }
 0x10c   : > { %v1109_v22 = vsub.f32 1.0, %v1045_v57  ;;  %v1110_v50 = vsub.f32 1.0, %v1046_v34  ;;  %v1169_v19 = vmax.f32 %v1105_v58, 0.0  ;;  %v1170_v36 = vmax.f32 %v1106_v56, 0.0 }
 0x10d   : > { %v1107_v10 = vsub.f32 1.0, %v1043_v47  ;;  %v1108_v18 = vsub.f32 1.0, %v1044_v54  ;;  %1251 = vmatpush.msra.mxu0 %v1203_v8  ;;  %1291 = vmatpush.msra.mxu2 %v1204_v6  ;;  %v1069_v15 = vsub.f32 1.0, %v1005_v17  ;;  %v1070_v28 = vsub.f32 1.0, %v1006_v63 }
 0x10e   : > { %v1173_v4 = vmax.f32 %v1109_v22, 0.0  ;;  %v1174_v30 = vmax.f32 %v1110_v50, 0.0  ;;  %v971_v51 = vsub.f32 %v2039_v24, %v2272_v16  ;;  %v972_v60 = vsub.f32 %v2041_v25, %v2272_v16 }
 0x10f   : > { %v1171_v53 = vmax.f32 %v1107_v10, 0.0  ;;  %v1172_v61 = vmax.f32 %v1108_v18, 0.0  ;;  %v839_v14 = vpop.permute.xlu1 %838  ;;  %v2478_v54 = vsub.f32 1.0, %v2199_v2  ;;  %v2479_v62 = vsub.f32 1.0, %v2210_v52 }
 0x110   : > { %v945_v3 = vsub.f32 %v2039_v24, %v839_v14  ;;  %v946_v43 = vsub.f32 %v2041_v25, %v839_v14  ;;  %v835_v29 = vpop.permute.xlu0 %834  ;;  %v1237_v48 = vmul.f32 %v1173_v4, %v784_v21  ;;  %v1238_v8 = vmul.f32 %v1174_v30, %v785_v1 }
 0x111   : > { %v943_v59 = vsub.f32 %v2039_v24, %v835_v29  ;;  %v944_v11 = vsub.f32 %v2041_v25, %v835_v29  ;;  %v819_v46 = vpop.permute.xlu2 %818  ;;  %v1235_v34 = vmul.f32 %v1171_v53, %v2261_v9  ;;  %v1236_v47 = vmul.f32 %v1172_v61, %v783_v32 }
 0x112   : > { %v1009_v42 = vand.u32 2147483647, %v945_v3  ;;  %v1010_v58 = vand.u32 2147483647, %v946_v43  ;;  %1270 = vmatpush.msra.mxu1 %v1237_v48  ;;  %1310 = vmatpush.msra.mxu3 %v1238_v8  ;;  %v2290_v26 = vmax.f32 %v2478_v54, 0.0  ;;  %v2294_v17 = vmax.f32 %v2479_v62, 0.0 }
 0x113   : > { %v1007_v56 = vand.u32 2147483647, %v943_v59  ;;  %v1008_v57 = vand.u32 2147483647, %v944_v11  ;;  %v1233_v10 = vmul.f32 %v1169_v19, %v2169_v20  ;;  %v1234_v18 = vmul.f32 %v1170_v36, %v2171_v5 }
 0x114   : > { %v1073_v63 = vsub.f32 1.0, %v1009_v42  ;;  %v1074_v22 = vsub.f32 1.0, %v1010_v58  ;;  %1271 = vmatpush.msra.mxu1 %v1235_v34  ;;  %1311 = vmatpush.msra.mxu3 %v1236_v47  ;;  %v1035_v9 = vand.u32 2147483647, %v971_v51  ;;  %v1036_v32 = vand.u32 2147483647, %v972_v60 }
 0x115   : > { %v1071_v16 = vsub.f32 1.0, %v1007_v56  ;;  %v1072_v50 = vsub.f32 1.0, %v1008_v57  ;;  %v1133_v21 = vmax.f32 %v1069_v15, 0.0  ;;  %v1134_v1 = vmax.f32 %v1070_v28, 0.0 }
 0x116   : > { %v1137_v6 = vmax.f32 %v1073_v63, 0.0  ;;  %v1138_v2 = vmax.f32 %v1074_v22, 0.0  ;;  %1272 = vmatpush.msra.mxu1 %v1233_v10  ;;  %1312 = vmatpush.msra.mxu3 %v1234_v18  ;;  %v935_v53 = vsub.f32 %v2039_v24, %v819_v46  ;;  %v936_v61 = vsub.f32 %v2041_v25, %v819_v46 }
 0x117   : > { %v1135_v4 = vmax.f32 %v1071_v16, 0.0  ;;  %v1136_v52 = vmax.f32 %v1072_v50, 0.0  ;;  %v899_v30 = vpop.permute.xlu1 %898  ;;  %v1099_v3 = vsub.f32 1.0, %v1035_v9  ;;  %v1100_v43 = vsub.f32 1.0, %v1036_v32 }
 0x118   : > { %v975_v14 = vsub.f32 %v2039_v24, %v899_v30  ;;  %v976_v20 = vsub.f32 %v2041_v25, %v899_v30  ;;  %v895_v5 = vpop.permute.xlu0 %894  ;;  %v1201_v15 = vmul.f32 %v1137_v6, %v2131_v37  ;;  %v1202_v28 = vmul.f32 %v1138_v2, %v2133_v38 }
 0x119   : > { %v973_v19 = vsub.f32 %v2039_v24, %v895_v5  ;;  %v974_v36 = vsub.f32 %v2041_v25, %v895_v5  ;;  %v879_v46 = vpop.permute.xlu2 %878  ;;  %v1199_v8 = vmul.f32 %v1135_v4, %v2135_v40  ;;  %v1200_v51 = vmul.f32 %v1136_v52, %v2137_v55 }
 0x11a   : > { %v1039_v29 = vand.u32 2147483647, %v975_v14  ;;  %v1040_v59 = vand.u32 2147483647, %v976_v20  ;;  %1252 = vmatpush.msra.mxu0 %v1201_v15  ;;  %1292 = vmatpush.msra.mxu2 %v1202_v28  ;;  %v999_v60 = vand.u32 2147483647, %v935_v53  ;;  %v1197_v38 = vmul.f32 %v1133_v21, %v1987_v35 }
 0x11b   : > { %v1037_v11 = vand.u32 2147483647, %v973_v19  ;;  %v1038_v48 = vand.u32 2147483647, %v974_v36  ;;  %v1000_v42 = vand.u32 2147483647, %v936_v61  ;;  %v1198_v34 = vmul.f32 %v1134_v1, %v1993_v39 }
 0x11c   : > { %v1103_v58 = vsub.f32 1.0, %v1039_v29  ;;  %v1104_v56 = vsub.f32 1.0, %v1040_v59  ;;  %1253 = vmatpush.msra.mxu0 %v1199_v8  ;;  %1293 = vmatpush.msra.mxu2 %v1200_v51  ;;  %v2480_v47 = vsub.f32 1.0, %v2213_v0  ;;  %v2481_v62 = vsub.f32 1.0, %v2218_v33 }
 0x11d   : > { %v1101_v37 = vsub.f32 1.0, %v1037_v11  ;;  %v1102_v57 = vsub.f32 1.0, %v1038_v48  ;;  %v1163_v22 = vmax.f32 %v1099_v3, 0.0  ;;  %v1164_v16 = vmax.f32 %v1100_v43, 0.0 }
 0x11e   : > { %v776_v54 = vmax.f32 %v2480_v47, 0.0  ;;  %v777_v40 = vmax.f32 %v2481_v62, 0.0  ;;  %v1167_v63 = vmax.f32 %v1103_v58, 0.0  ;;  %v1168_v55 = vmax.f32 %v1104_v56, 0.0  ;;  %1254 = vmatpush.msra.mxu0 %v1197_v38  ;;  %1294 = vmatpush.msra.mxu2 %v1198_v34 }
 0x11f   : > { %v1165_v50 = vmax.f32 %v1101_v37, 0.0  ;;  %v1166_v10 = vmax.f32 %v1102_v57, 0.0  ;;  %v827_v18 = vpop.permute.xlu1 %826  ;;  %v1063_v9 = vsub.f32 1.0, %v999_v60  ;;  %v1064_v32 = vsub.f32 1.0, %v1000_v42 }
 0x120   : > { %v939_v35 = vsub.f32 %v2039_v24, %v827_v18  ;;  %v940_v39 = vsub.f32 %v2041_v25, %v827_v18  ;;  %v823_v0 = vpop.permute.xlu0 %822  ;;  %v1231_v2 = vmul.f32 %v1167_v63, %v2290_v26  ;;  %v1232_v21 = vmul.f32 %v1168_v55, %v2294_v17 }
 0x121   : > { %v937_v6 = vsub.f32 %v2039_v24, %v823_v0  ;;  %v938_v33 = vsub.f32 %v2041_v25, %v823_v0  ;;  %v965_v1 = vsub.f32 %v2039_v24, %v879_v46  ;;  %v966_v4 = vsub.f32 %v2041_v25, %v879_v46  ;;  %v807_v43 = vpop.permute.xlu2 %806 }
 0x122   : > { %v1003_v52 = vand.u32 2147483647, %v939_v35  ;;  %v1004_v30 = vand.u32 2147483647, %v940_v39  ;;  %1273 = vmatpush.msra.mxu1 %v1231_v2  ;;  %1313 = vmatpush.msra.mxu3 %v1232_v21  ;;  %v1229_v14 = vmul.f32 %v1165_v50, %v776_v54  ;;  %v1230_v20 = vmul.f32 %v1166_v10, %v777_v40  ;;  %v2484_v39 = vld [vmem:[#allocation15_spill] sm:$0xff]  ;;  %v2487_v21 = vld [vmem:[#allocation33_spill] sm:$0xff] }
 0x123   : > { %v1001_v53 = vand.u32 2147483647, %v937_v6  ;;  %v1002_v61 = vand.u32 2147483647, %v938_v33  ;;  %v2482_v5 = vsub.f32 1.0, %v2179_v45  ;;  %v2483_v26 = vsub.f32 1.0, %v2181_v27 }
 0x124   : > { %v1067_v17 = vsub.f32 1.0, %v1003_v52  ;;  %v1068_v15 = vsub.f32 1.0, %v1004_v30  ;;  %1274 = vmatpush.msra.mxu1 %v1229_v14  ;;  %1314 = vmatpush.msra.mxu3 %v1230_v20  ;;  %v1227_v29 = vmul.f32 %v1163_v22, %v2139_v13  ;;  %v1228_v59 = vmul.f32 %v1164_v16, %v2141_v44  ;;  %v2485_v6 = vld [vmem:[#allocation29_spill] sm:$0xff] }
 0x125   : > { %v2324_v19 = vmax.f32 %v2482_v5, 0.0  ;;  %v2328_v36 = vmax.f32 %v2483_v26, 0.0  ;;  %v1065_v28 = vsub.f32 1.0, %v1001_v53  ;;  %v1066_v3 = vsub.f32 1.0, %v1002_v61 }
 0x126   : > { %v1029_v11 = vand.u32 2147483647, %v965_v1  ;;  %v1030_v48 = vand.u32 2147483647, %v966_v4  ;;  %v1131_v45 = vmax.f32 %v1067_v17, 0.0  ;;  %v1132_v46 = vmax.f32 %v1068_v15, 0.0  ;;  %1275 = vmatpush.msra.mxu1 %v1227_v29  ;;  %1315 = vmatpush.msra.mxu3 %v1228_v59 }
 0x127   : > { %v1127_v8 = vmax.f32 %v1063_v9, 0.0  ;;  %v1128_v51 = vmax.f32 %v1064_v32, 0.0  ;;  %v1129_v27 = vmax.f32 %v1065_v28, 0.0  ;;  %v1130_v60 = vmax.f32 %v1066_v3, 0.0  ;;  %v887_v42 = vpop.permute.xlu1 %886 }
 0x128   : > { %v929_v58 = vsub.f32 %v2039_v24, %v807_v43  ;;  %v930_v56 = vsub.f32 %v2041_v25, %v807_v43  ;;  %v969_v37 = vsub.f32 %v2039_v24, %v887_v42  ;;  %v970_v13 = vsub.f32 %v2041_v25, %v887_v42  ;;  %v883_v44 = vpop.permute.xlu0 %882 }
 0x129   : > { %v967_v57 = vsub.f32 %v2039_v24, %v883_v44  ;;  %v968_v38 = vsub.f32 %v2041_v25, %v883_v44  ;;  %v1195_v34 = vmul.f32 %v1131_v45, %v2087_v41  ;;  %v1196_v47 = vmul.f32 %v1132_v46, %v2089_v7  ;;  %v867_v14 = vpop.permute.xlu2 %866  ;;  %v2491_v44 = vld [vmem:[#allocation27_spill] sm:$0xff] }
 0x12a   : > { %v1093_v54 = vsub.f32 1.0, %v1029_v11  ;;  %v1094_v62 = vsub.f32 1.0, %v1030_v48  ;;  %v1033_v40 = vand.u32 2147483647, %v969_v37  ;;  %v1034_v63 = vand.u32 2147483647, %v970_v13 }
 0x12b   : > { %v1031_v55 = vand.u32 2147483647, %v967_v57  ;;  %v1032_v22 = vand.u32 2147483647, %v968_v38  ;;  %1255 = vmatpush.msra.mxu0 %v1195_v34  ;;  %1295 = vmatpush.msra.mxu2 %v1196_v47  ;;  %v1193_v16 = vmul.f32 %v1129_v27, %v2121_v12  ;;  %v1194_v50 = vmul.f32 %v1130_v60, %v2125_v23  ;;  %v2489_v60 = vld [vmem:[#allocation30_spill] sm:$0xff]  ;;  %v2492_v38 = vld [vmem:[#allocation28_spill] sm:$0xff] }
 0x12c   : > { %v993_v10 = vand.u32 2147483647, %v929_v58  ;;  %v994_v18 = vand.u32 2147483647, %v930_v56  ;;  %v1097_v9 = vsub.f32 1.0, %v1033_v40  ;;  %v1098_v32 = vsub.f32 1.0, %v1034_v63 }
 0x12d   : > { %v1095_v35 = vsub.f32 1.0, %v1031_v55  ;;  %v1096_v41 = vsub.f32 1.0, %v1032_v22  ;;  %1256 = vmatpush.msra.mxu0 %v1193_v16  ;;  %1296 = vmatpush.msra.mxu2 %v1194_v50  ;;  %v1191_v7 = vmul.f32 %v1127_v8, %v1983_v31  ;;  %v1192_v0 = vmul.f32 %v1128_v51, %v2484_v39  ;;  %v2490_v58 = vld [vmem:[#allocation31_spill] sm:$0xff]  ;;  %v2495_v39 = vld [vmem:[#allocation32_spill] sm:$0xff] }
 0x12e   : > { %v2486_v33 = vsub.f32 1.0, %v2485_v6  ;;  %v2488_v1 = vsub.f32 1.0, %v2487_v21  ;;  %v1161_v4 = vmax.f32 %v1097_v9, 0.0  ;;  %v1162_v23 = vmax.f32 %v1098_v32, 0.0  ;;  %v2493_v32 = vld [vmem:[#allocation13_spill] sm:$0xff]  ;;  %v2496_v6 = vld [vmem:[#allocation34_spill] sm:$0xff] }
 0x12f   : > { %v1157_v52 = vmax.f32 %v1093_v54, 0.0  ;;  %v1158_v30 = vmax.f32 %v1094_v62, 0.0  ;;  %v1159_v53 = vmax.f32 %v1095_v35, 0.0  ;;  %v1160_v61 = vmax.f32 %v1096_v41, 0.0  ;;  %1257 = vmatpush.msra.mxu0 %v1191_v7  ;;  %1297 = vmatpush.msra.mxu2 %v1192_v0  ;;  %v815_v20 = vpop.permute.xlu1 %814  ;;  %v2494_v41 = vld [vmem:[#allocation14_spill] sm:$0xff] }
 0x130   : > { %v770_v2 = vmax.f32 %v2486_v33, 0.0  ;;  %v771_v12 = vmax.f32 %v2488_v1, 0.0  ;;  %v1057_v5 = vsub.f32 1.0, %v993_v10  ;;  %v1058_v31 = vsub.f32 1.0, %v994_v18  ;;  %v811_v15 = vpop.permute.xlu0 %810 }
 0x131   : > { %v933_v26 = vsub.f32 %v2039_v24, %v815_v20  ;;  %v934_v17 = vsub.f32 %v2041_v25, %v815_v20  ;;  %v931_v28 = vsub.f32 %v2039_v24, %v811_v15  ;;  %v932_v3 = vsub.f32 %v2041_v25, %v811_v15  ;;  %v2500_v15 = vld [vmem:[#allocation20_spill] sm:$0xff] }
 0x132   : > { %v1225_v43 = vmul.f32 %v1161_v4, %v2324_v19  ;;  %v1226_v29 = vmul.f32 %v1162_v23, %v2328_v36  ;;  %v959_v59 = vsub.f32 %v2039_v24, %v867_v14  ;;  %v960_v11 = vsub.f32 %v2041_v25, %v867_v14  ;;  %v2497_v4 = vld [vmem:[#allocation23_spill] sm:$0xff] }
 0x133   : > { %v997_v48 = vand.u32 2147483647, %v933_v26  ;;  %v998_v45 = vand.u32 2147483647, %v934_v17  ;;  %v995_v46 = vand.u32 2147483647, %v931_v28  ;;  %v1223_v51 = vmul.f32 %v1159_v53, %v770_v2 }
 0x134   : > { %v996_v8 = vand.u32 2147483647, %v932_v3  ;;  %1276 = vmatpush.msra.mxu1 %v1225_v43  ;;  %1316 = vmatpush.msra.mxu3 %v1226_v29  ;;  %v1224_v27 = vmul.f32 %v1160_v61, %v771_v12  ;;  %v702_v42 = vsub.f32 1.0, %v2489_v60  ;;  %v703_v56 = vsub.f32 1.0, %v2490_v58  ;;  %v2499_v26 = vld [vmem:[#allocation19_spill] sm:$0xff] }
 0x135   : > { %v1061_v37 = vsub.f32 1.0, %v997_v48  ;;  %v1062_v19 = vsub.f32 1.0, %v998_v45  ;;  %v1059_v13 = vsub.f32 1.0, %v995_v46  ;;  %v1221_v57 = vmul.f32 %v1157_v52, %v2491_v44  ;;  %v2498_v52 = vld [vmem:[#allocation24_spill] sm:$0xff] }
 0x136   : > { %v1060_v36 = vsub.f32 1.0, %v996_v8  ;;  %1277 = vmatpush.msra.mxu1 %v1223_v51  ;;  %1317 = vmatpush.msra.mxu3 %v1224_v27  ;;  %v1222_v34 = vmul.f32 %v1158_v30, %v2492_v38  ;;  %v1121_v47 = vmax.f32 %v1057_v5, 0.0  ;;  %v1122_v54 = vmax.f32 %v1058_v31, 0.0  ;;  %v2502_v44 = vld [vmem:[#allocation12_spill] sm:$0xff] }
 0x137   : > { %v1125_v62 = vmax.f32 %v1061_v37, 0.0  ;;  %v1126_v40 = vmax.f32 %v1062_v19, 0.0  ;;  %v1023_v63 = vand.u32 2147483647, %v959_v59  ;;  %v1024_v55 = vand.u32 2147483647, %v960_v11  ;;  %v875_v50 = vpop.permute.xlu1 %874 }
 0x138   : > { %v1123_v22 = vmax.f32 %v1059_v13, 0.0  ;;  %v1124_v16 = vmax.f32 %v1060_v36, 0.0  ;;  %1278 = vmatpush.msra.mxu1 %v1221_v57  ;;  %1318 = vmatpush.msra.mxu3 %v1222_v34  ;;  %v963_v10 = vsub.f32 %v2039_v24, %v875_v50  ;;  %v964_v18 = vsub.f32 %v2041_v25, %v875_v50  ;;  %v871_v9 = vpop.permute.xlu0 %870  ;;  %v2501_v36 = vld [vmem:[#allocation18_spill] sm:$0xff] }
 0x139   : > { %v1189_v35 = vmul.f32 %v1125_v62, %v2493_v32  ;;  %v1190_v7 = vmul.f32 %v1126_v40, %v2494_v41  ;;  %v700_v0 = vsub.f32 1.0, %v2495_v39  ;;  %v701_v33 = vsub.f32 1.0, %v2496_v6  ;;  %v2506_v41 = vld [vmem:[#allocation26_spill] sm:$0xff] }
 0x13a   : > { %v961_v2 = vsub.f32 %v2039_v24, %v871_v9  ;;  %v962_v21 = vsub.f32 %v2041_v25, %v871_v9  ;;  %v1027_v1 = vand.u32 2147483647, %v963_v10  ;;  %v1028_v12 = vand.u32 2147483647, %v964_v18 }
 0x13b   : > { %1258 = vmatpush.msra.mxu0 %v1189_v35  ;;  %1298 = vmatpush.msra.mxu2 %v1190_v7  ;;  %v1187_v23 = vmul.f32 %v1123_v22, %v2497_v4  ;;  %v1188_v30 = vmul.f32 %v1124_v16, %v2498_v52  ;;  %v1087_v53 = vsub.f32 1.0, %v1023_v63  ;;  %v1088_v61 = vsub.f32 1.0, %v1024_v55  ;;  %v2503_v55 = vld [vmem:[#allocation16_spill] sm:$0xff]  ;;  %v2504_v16 = vld [vmem:[#allocation17_spill] sm:$0xff] }
 0x13c   : > { %v1025_v14 = vand.u32 2147483647, %v961_v2  ;;  %v1026_v20 = vand.u32 2147483647, %v962_v21  ;;  %v1091_v5 = vsub.f32 1.0, %v1027_v1  ;;  %v1092_v31 = vsub.f32 1.0, %v1028_v12 }
 0x13d   : > { %1259 = vmatpush.msra.mxu0 %v1187_v23  ;;  %1299 = vmatpush.msra.mxu2 %v1188_v30  ;;  %v1185_v17 = vmul.f32 %v1121_v47, %v2499_v26  ;;  %v1186_v28 = vmul.f32 %v1122_v54, %v2500_v15  ;;  %v766_v3 = vmax.f32 %v702_v42, 0.0  ;;  %v767_v43 = vmax.f32 %v703_v56, 0.0  ;;  %v2507_v2 = vld [vmem:[#allocation21_spill] sm:$0xff]  ;;  %v2509_v12 = vld [vmem:[#allocation22_spill] sm:$0xff] }
 0x13e   : > { %v1089_v29 = vsub.f32 1.0, %v1025_v14  ;;  %v1090_v59 = vsub.f32 1.0, %v1026_v20  ;;  %v764_v11 = vmax.f32 %v700_v0, 0.0  ;;  %v765_v48 = vmax.f32 %v701_v33, 0.0 }
 0x13f   : > { %v1155_v45 = vmax.f32 %v1091_v5, 0.0  ;;  %v1156_v46 = vmax.f32 %v1092_v31, 0.0  ;;  %1260 = vmatpush.msra.mxu0 %v1185_v17  ;;  %1300 = vmatpush.msra.mxu2 %v1186_v28  ;;  %v1151_v8 = vmax.f32 %v1087_v53, 0.0  ;;  %v1152_v51 = vmax.f32 %v1088_v61, 0.0  ;;  %v803_v58 = vpop.permute.xlu1 %802 }
 0x140   : > { %v1153_v27 = vmax.f32 %v1089_v29, 0.0  ;;  %v1154_v60 = vmax.f32 %v1090_v59, 0.0  ;;  %v927_v37 = vsub.f32 %v2039_v24, %v803_v58  ;;  %v928_v19 = vsub.f32 %v2041_v25, %v803_v58  ;;  %v799_v13 = vpop.permute.xlu0 %798  ;;  %v335_v58 = vld [vmem:[%s1819_s30 + $0x8] sm:$0x1f] }
 0x141   : > { %v1219_v42 = vmul.f32 %v1155_v45, %v766_v3  ;;  %v1220_v56 = vmul.f32 %v1156_v46, %v767_v43  ;;  %v568_v57 = vsub.f32 %v2502_v44, %v2501_v36  ;;  %v569_v38 = vsub.f32 %v1942_v49, %v2501_v36  ;;  %v2505_v49 = vld [vmem:[#allocation25_spill] sm:$0xff] }
 0x142   : > { %v925_v34 = vsub.f32 %v2039_v24, %v799_v13  ;;  %v926_v47 = vsub.f32 %v2041_v25, %v799_v13  ;;  %v991_v54 = vand.u32 2147483647, %v927_v37  ;;  %v992_v62 = vand.u32 2147483647, %v928_v19  ;;  %v1245_v19 = vld [vmem:[#allocation2] sm:$0x1f] }
 0x143   : > { %1279 = vmatpush.msra.mxu1 %v1219_v42  ;;  %1319 = vmatpush.msra.mxu3 %v1220_v56  ;;  %v1217_v40 = vmul.f32 %v1153_v27, %v764_v11  ;;  %v1218_v63 = vmul.f32 %v1154_v60, %v765_v48  ;;  %v664_v22 = vsub.f32 1.0, %v2503_v55  ;;  %v665_v50 = vsub.f32 1.0, %v2504_v16  ;;  %v334_v48 = vld [vmem:[%s1819_s30] sm:$0x1f]  ;;  %v1246_v44 = vld [vmem:[#allocation2 + $0x8] sm:$0x1f] }
 0x144   : > { %v989_v10 = vand.u32 2147483647, %v925_v34  ;;  %v990_v18 = vand.u32 2147483647, %v926_v47  ;;  %v1055_v9 = vsub.f32 1.0, %v991_v54  ;;  %v1056_v32 = vsub.f32 1.0, %v992_v62 }
 0x145   : > { %1280 = vmatpush.msra.mxu1 %v1217_v40  ;;  %1320 = vmatpush.msra.mxu3 %v1218_v63  ;;  %v1215_v35 = vmul.f32 %v1151_v8, %v2505_v49  ;;  %v1216_v7 = vmul.f32 %v1152_v51, %v2506_v41  ;;  %v632_v39 = vand.u32 2147483647, %v568_v57  ;;  %v633_v0 = vand.u32 2147483647, %v569_v38 }
 0x146   : > { %v1053_v6 = vsub.f32 1.0, %v989_v10  ;;  %v1054_v33 = vsub.f32 1.0, %v990_v18  ;;  %v2508_v21 = vsub.f32 1.0, %v2507_v2  ;;  %v2510_v4 = vsub.f32 1.0, %v2509_v12 }
 0x147   : > { %v1119_v52 = vmax.f32 %v1055_v9, 0.0  ;;  %v1120_v30 = vmax.f32 %v1056_v32, 0.0  ;;  %1281 = vmatpush.msra.mxu1 %v1215_v35  ;;  %1321 = vmatpush.msra.mxu3 %v1216_v7  ;;  %v728_v53 = vmax.f32 %v664_v22, 0.0  ;;  %v729_v61 = vmax.f32 %v665_v50, 0.0  ;;  %v863_v5 = vpop.permute.xlu1 %862 }
 0x148   : > { %v730_v1 = vmax.f32 %v2508_v21, 0.0  ;;  %v731_v23 = vmax.f32 %v2510_v4, 0.0  ;;  %v1117_v14 = vmax.f32 %v1053_v6, 0.0  ;;  %v1118_v20 = vmax.f32 %v1054_v33, 0.0 }
 0x149   : > { %v957_v31 = vsub.f32 %v2039_v24, %v863_v5  ;;  %v958_v26 = vsub.f32 %v2041_v25, %v863_v5  ;;  %v696_v28 = vsub.f32 1.0, %v632_v39  ;;  %v697_v3 = vsub.f32 1.0, %v633_v0 }
 0x14a   : > { %v1183_v17 = vmul.f32 %v1119_v52, %v730_v1  ;;  %v1184_v15 = vmul.f32 %v1120_v30, %v731_v23  ;;  %v1181_v59 = vmul.f32 %v1117_v14, %v728_v53  ;;  %v1182_v11 = vmul.f32 %v1118_v20, %v729_v61 }
 0x14b   : > { %v1021_v43 = vand.u32 2147483647, %v957_v31  ;;  %v1022_v29 = vand.u32 2147483647, %v958_v26  ;;  %v760_v24 = vmax.f32 %v696_v28, 0.0  ;;  %v761_v25 = vmax.f32 %v697_v3, 0.0 }
 0x14c   : > { %1261 = vmatpush.msra.mxu0 %v1183_v17  ;;  %1301 = vmatpush.msra.mxu2 %v1184_v15 }
 0x14d   : > { %v1085_v45 = vsub.f32 1.0, %v1021_v43  ;;  %v1086_v46 = vsub.f32 1.0, %v1022_v29 }
 0x14e   : > { %1262 = vmatpush.msra.mxu0 %v1181_v59  ;;  %1302 = vmatpush.msra.mxu2 %v1182_v11 }
 0x14f   : > { %1303 = vmatmul.f32.vlgmr.msra.gmra.mxu2 %v334_v48  ;;  %1263 = vmatmul.f32.vlgmr.msra.gmra.mxu0 %v334_v48  ;;  %v1149_v8 = vmax.f32 %v1085_v45, 0.0  ;;  %v1150_v51 = vmax.f32 %v1086_v46, 0.0 }
 0x151   : > { %v1213_v27 = vmul.f32 %v1149_v8, %v760_v24  ;;  %v1214_v60 = vmul.f32 %v1150_v51, %v761_v25 }
 0x153   : > { %1282 = vmatpush.msra.mxu1 %v1213_v27  ;;  %1322 = vmatpush.msra.mxu3 %v1214_v60 }
 0x154   : > { %1323 = vmatmul.f32.vlgmr.msra.gmra.mxu3 %v335_v58  ;;  %1283 = vmatmul.f32.vlgmr.msra.gmra.mxu1 %v335_v58 }
 0x1cc   : > { %v1264_v37 = vpop.f32.mrf.mxu0 }
 0x1d1   : > { %v1284_v13 = vpop.f32.mrf.mxu1 }
 0x1d2   : > { %v1285_v42 = vadd.f32 %v1284_v13, %v1264_v37  ;;  %v1304_v36 = vpop.f32.mrf.mxu2 }
 0x1d4   : > { %v1327_v56 = vadd.f32 %v1285_v42, %v1245_v19 }
 0x1d6   : > { %1329 = vst [vmem:[#allocation2] sm:$0x1f] %v1327_v56 }
 0x1d7   : > { %v1324_v57 = vpop.f32.mrf.mxu3 }
 0x1d8   : > { %v1325_v38 = vadd.f32 %v1324_v57, %v1304_v36 }
 0x1da   : > { %v1328_v34 = vadd.f32 %v1325_v38, %v1246_v44 }
 0x1dc   : > { %1330 = vst [vmem:[#allocation2 + $0x8] sm:$0x1f] %v1328_v34 }
 0x1dd PF: > { %v1334_v47 = vld [vmem:[#allocation2] sm:$0x1f]  ;;  %s1531_s18 = sshll.u32 %s1700_s28, 3  ;;  %s1395_s28 = sshll.u32 %s282_s1, 4  ;;  %vm1375_vm10 = vcmask 1043456   ;;  %s1396_s28 = int_to_ptr.vmem [resolvable:$true] %s1395_s28 }
 0x1de   : > { %vm1336_vm0 = vcmp.eq.f32.partialorder %v1334_v47, 0.0  ;;  %s1393_s21 = scalar_lea.hbm %s2438_s5, %s1531_s18  ;;  %s2511_s23 = sand.u32 1, %s1692_s27  }
 0x1df   : > { %v1338_v62 = vsel %vm1336_vm0, 1.0, %v1334_v47  ;;  %s1397_s22 = sshll.u32 %s1393_s21, 4  ;;  %s1380_s24 = scalar_lea.sflag [#allocation7], %s2511_s23  ;;  %s1398_s22 = int_to_ptr.hbm [resolvable:$true] %s1397_s22 }
 0x1e0   : > { %v1340_v63 = vperm.slane %v1338_v62, 4  ;;  %s1642_s25 = sshra.s32 %s1398_s22, 4  ;;  %s1648_s10 = scalar_lea.hbm %s2438_s5, 16  ;;  %s1643_s25 = int_to_ptr.hbm [resolvable:$true] %s1642_s25 }
 0x1e1   : > { %s1644_s30 = scalar_lea.hbm %s1643_s25, 8  ;;  %p1649_p5 = scmp.lt.s32.totalorder %s1643_s25, %s2438_s5 }
 0x1e2   : > { %1600 = vrcp.f32 %v1340_v63  ;;  %vm1347_vm2 = vweird.f32 %v1340_v63  ;;  %v1353_v10 = vand.u32 2147483648, %v1340_v63  ;;  %v1351_v32 = vand.u32 2147483647, %v1340_v63  ;;  %p1645_p1 = scmp.ne.s32.totalorder %s1643_s25, %s1644_s30  ;;  %p1650_p6 = scmp.lt.s32.totalorder %s1648_s10, %s1644_s30 }
 0x1e3   : > { %v1335_v54 = vld [vmem:[#allocation2 + $0x8] sm:$0x1f] }
 0x1e4   : > { %vm1337_vm1 = vcmp.eq.f32.partialorder %v1335_v54, 0.0  ;;  %v1354_v39 = vor.u32 1.1754944e-38, %v1353_v10  ;;  %vm1352_vm7 = vcmp.eq.f32.partialorder %v1351_v32, 8.507059e+37  ;;  %p1646_p2 = pnand %p1645_p1, %p1791_p4  ;;  %p1651_p7 = por %p1650_p6, %p1649_p5 }
 0x1e5   : > { %v1339_v40 = vsel %vm1337_vm1, 1.0, %v1335_v54 }
 0x1e6   : > { %v1341_v55 = vperm.slane %v1339_v40, 4  ;;  %p1647_p3 = pneg %p1646_p2 }
 0x1e8   : > { %1602 = vrcp.f32 %v1341_v55  ;;  %v1601_v22 = vpop.eup %1600  ;;  %v1368_v49 = vand.u32 2147483648, %v1341_v55  ;;  %vm1362_vm4 = vweird.f32 %v1341_v55  ;;  %v1366_v41 = vand.u32 2147483647, %v1341_v55  ;;  %p1652_p9 = pnand %p1651_p7, %p1647_p3 }
 0x1e9   : > { %v1343_v50 = vmul.f32 %v1601_v22, %v1340_v63  ;;  %vm1348_vm3 = vweird.f32 %v1601_v22 }
 0x1ea   : > { %vm1349_vm6 = vmor %vm1347_vm2, %vm1348_vm3  ;;  %v1369_v33 = vor.u32 1.1754944e-38, %v1368_v49  ;;  %vm1367_vm9 = vcmp.eq.f32.partialorder %v1366_v41, 8.507059e+37 }
 0x1eb   : > { %v1344_v9 = vsub.f32 1.0, %v1343_v50 }
 0x1ed   : > { %v1345_v7 = vmul.f32 %v1601_v22, %v1344_v9 }
 0x1ee   : > { %v1603_v16 = vpop.eup %1602 }
 0x1ef   : > { %v1358_v18 = vmul.f32 %v1603_v16, %v1341_v55  ;;  %vm1363_vm5 = vweird.f32 %v1603_v16  ;;  %v1346_v6 = vadd.f32 %v1601_v22, %v1345_v7 }
 0x1f0   : > { %vm1364_vm8 = vmor %vm1362_vm4, %vm1363_vm5 }
 0x1f1   : > { %v1359_v35 = vsub.f32 1.0, %v1358_v18  ;;  %v1350_v21 = vsel %vm1349_vm6, %v1601_v22, %v1346_v6 }
 0x1f2   : > { %v1355_v1 = vsel %vm1352_vm7, %v1354_v39, %v1350_v21 }
 0x1f3   : > { %v1360_v0 = vmul.f32 %v1603_v16, %v1359_v35  ;;  %v1356_v23 = vmul.f32 %v1355_v1, %v1334_v47 }
 0x1f5   : > { %v1361_v2 = vadd.f32 %v1603_v16, %v1360_v0 }
 0x1f7   : > { %v1365_v12 = vsel %vm1364_vm8, %v1603_v16, %v1361_v2 }
 0x1f8   : > { %v1370_v4 = vsel %vm1367_vm9, %v1369_v33, %v1365_v12 }
 0x1f9   : > { %v1371_v52 = vmul.f32 %v1370_v4, %v1335_v54 }
 0x1fb   : > { %v1374_v30 = vrot.slane %v1371_v52, 4 }
 0x1fd   : > { %v1376_v53 = vsel %vm1375_vm10, %v1356_v23, %v1374_v30 }
 0x1fe   : > { %1378 = vst [vmem:[%s282_s1] sm:$0xff] %v1376_v53 }
 0x1ff   : > { %1655 = shalt.err (!%p1652_p9)
}
 0x200   : > { %1532 = dma.vmem_to_hbm [thread:$0]  (%p1791_p4), %s1396_s28, 128, %s1398_s22, %s1380_s24  }
 0x201 PF: > { %p1538_p10 = scmp.ge.s32.totalorder %s1708_s29, 2  ;;  %s1409_s1 = sand.u32 1, %s1688_s26  }
 0x202   : > { %s1410_s15 = scalar_lea.sflag [#allocation7], %s1409_s1 }
 0x203   : > { %p1535_p11 = pnand %p1538_p10, %p1798_p8 }
 0x205   : > { %p1536_p12 = pneg %p1535_p11 }
 0x207   : > { %1683 = dma.done.wait (%p1536_p12), %s1410_s15, 128  }
 0x208   : > { %1685 = vsyncadd (%p1536_p12), %s1410_s15, 4294967168  ;;  %s31_s29 = sadd.s32 1, %s1708_s29   ;;  %s2512_s28 = sld [smem:[#allocation10_spill]] }
 0x209   : > { %p28_p13 = scmp.ge.s32.totalorder %s31_s29, 4   ;;  %s2513_s1 = sld [smem:[#allocation11_spill]] }
 0x20a   : > { %s2514_s26 = smov %s1692_s27  ;;  %s2515_s27 = smov %s1696_s0 }
 0x20b   : > { %s2516_s0 = smov %s1804_s12  ;;  %30 = sbr.rel (!%p28_p13) target bundleno = 11 (0xb), region = 86 }
 0x210   :  { %1416 = vsyncpa [#allocation7], 1 }
 0x211   :  { %1418 = vsyncpa [#allocation7 + $0x1], 1 }

</bundles_post_ra>
